<compile_context>
chip_gen: v7x
topology: tpu7x:2x2x1
jax: 0.10.0
libtpu: 0.0.40
codegen_flags: <defaults>
</compile_context>

<pallas_src>
import functools

import jax
import jax.numpy as jnp
import numpy as np
from jax.experimental import pallas as pl
from jax.experimental.pallas import tpu as pltpu


def _round_up(x, m):
    return (x + m - 1) // m * m


# --------------------------------------------------------------------------
# Pallas kernels
# --------------------------------------------------------------------------
def _conv3x3_bn_stats_kernel(*refs, Ws, P, Cin_pad, two_inputs, apply_act):
    """Fused [optional affine+ReLU on input] -> 3x3 'same' conv -> BN partials.

    Layout is channel-major flat: activations are (C, P) with P = H*W on the
    128-lane axis.  The conv is done as 3 accumulated MXU matmuls, one per
    kernel row (dy):  (Cout, 3*Cin_pad) @ (3*Cin_pad, P), where the 3-tap
    patch slab is built in a VMEM scratch with lane rolls + border masks
    (zero-padding semantics).

    refs (in order):
      xa_ref              (1, Ca, P)    input (first chunk of channels)
      [xb_ref]            (1, Cb, P)    second chunk (fused channel concat)
      [s_ref, b_ref]      (Cin_pad, 1)  folded BN scale/bias applied to input
      w_ref               (3, Cout_pad, 3*Cin_pad)
      m_ref               (9, P)        per-tap border masks (f32 0/1)
      o_ref               (1, Cout_pad, P)  conv output (lane-dense store)
      sum_ref, ssq_ref    (1, Cout_pad, 1)  per-image per-channel partials
      patch_ref           (3*Cin_pad, P)    VMEM scratch (3-tap slab)
    """
    refs = list(refs)
    xa_ref = refs.pop(0)
    xb_ref = refs.pop(0) if two_inputs else None
    if apply_act:
        s_ref = refs.pop(0)
        b_ref = refs.pop(0)
    w_ref, m_ref, o_ref, sum_ref, ssq_ref, patch_ref = refs

    x = xa_ref[0].astype(jnp.float32)                      # (Ca, P)
    if two_inputs:                                         # fused torch.cat
        x = jnp.concatenate([x, xb_ref[0].astype(jnp.float32)], axis=0)
    if apply_act:                                          # fused BN+ReLU of
        x = jnp.maximum(x * s_ref[...] + b_ref[...], 0.0)  # the previous conv

    # im2col via lane rolls into the scratch slab, one kernel row at a time:
    # tap (dy, dx) needs x[c, r+dy-1, w+dx-1] with zero padding at the border.
    acc = None
    for dy in range(3):
        for dx in range(3):
            off = (dy - 1) * Ws + (dx - 1)
            if off == 0:
                tap = x                                    # center tap
            else:
                t = dy * 3 + dx
                tap = (pltpu.roll(x, shift=(-off) % P, axis=1)
                       * m_ref[pl.ds(t, 1), :])            # (Cin,P)*(1,P)
            patch_ref[pl.ds(dx * Cin_pad, Cin_pad), :] = tap
        part = jnp.dot(w_ref[dy], patch_ref[...],
                       preferred_element_type=jnp.float32)  # (Cout_pad, P)
        acc = part if acc is None else acc + part

    o_ref[0] = acc.astype(o_ref.dtype)                     # lane-dense store

    # Per-channel sum / sum-of-squares on the (idle) MXU instead of the XLU.
    ones = jnp.ones((P, 1), jnp.float32)
    sum_ref[0] = jnp.dot(acc, ones, preferred_element_type=jnp.float32)
    ssq_ref[0] = jnp.dot(acc * acc, ones, preferred_element_type=jnp.float32)


def _bn_relu_kernel(x_ref, s_ref, b_ref, o_ref):
    """Final per-channel affine (folded BN) + ReLU, channel-major layout.

    x_ref/o_ref: (1, C, P); s_ref/b_ref: (C, 1).
    """
    y = x_ref[0] * s_ref[...] + b_ref[...]
    o_ref[0] = jnp.maximum(y, 0.0).astype(o_ref.dtype)


# --------------------------------------------------------------------------
# Pallas wrappers
# --------------------------------------------------------------------------
def conv3x3_bn_stats(xa, xb, w_k, masks, scale, bias, *, Ws, Cin_pad):
    """3x3 'same' conv (no bias) in channel-major flat layout.

    xa:    (N, Ca, P)                 first channel chunk
    xb:    (N, Cb, P) or None         second chunk, concatenated in-kernel
    w_k:   (3, Cout_pad, 3*Cin_pad)   weights, grouped by dy, cols (dx, cin)
    masks: (9, P)                     border masks
    scale/bias: (Cin_pad,) or None    folded BN applied (with ReLU) to input

    Returns (y, ch_sum, ch_ssq):
      (N, Cout_pad, P), (N, Cout_pad, 1), (N, Cout_pad, 1)  [per-image partials]
    """
    N, Ca, P = xa.shape
    Cb = 0 if xb is None else xb.shape[1]
    assert Ca + Cb == Cin_pad, (Ca, Cb, Cin_pad)
    Cout_pad = w_k.shape[1]
    assert w_k.shape[2] == 3 * Cin_pad
    two_inputs = xb is not None
    apply_act = scale is not None

    kernel = functools.partial(_conv3x3_bn_stats_kernel, Ws=Ws, P=P,
                               Cin_pad=Cin_pad, two_inputs=two_inputs,
                               apply_act=apply_act)

    in_specs = [pl.BlockSpec((1, Ca, P), lambda n: (n, 0, 0))]
    inputs = [xa]
    if two_inputs:
        in_specs.append(pl.BlockSpec((1, Cb, P), lambda n: (n, 0, 0)))
        inputs.append(xb)
    if apply_act:
        in_specs.append(pl.BlockSpec((Cin_pad, 1), lambda n: (0, 0)))
        in_specs.append(pl.BlockSpec((Cin_pad, 1), lambda n: (0, 0)))
        inputs.append(scale.reshape(Cin_pad, 1).astype(jnp.float32))
        inputs.append(bias.reshape(Cin_pad, 1).astype(jnp.float32))
    in_specs.append(pl.BlockSpec((3, Cout_pad, 3 * Cin_pad), lambda n: (0, 0, 0)))
    in_specs.append(pl.BlockSpec((9, P), lambda n: (0, 0)))
    inputs.extend([w_k, masks])

    out_shape = (
        jax.ShapeDtypeStruct((N, Cout_pad, P), jnp.float32),
        jax.ShapeDtypeStruct((N, Cout_pad, 1), jnp.float32),
        jax.ShapeDtypeStruct((N, Cout_pad, 1), jnp.float32),
    )
    out_specs = [
        pl.BlockSpec((1, Cout_pad, P), lambda n: (n, 0, 0)),
        pl.BlockSpec((1, Cout_pad, 1), lambda n: (n, 0, 0)),   # per-image partial
        pl.BlockSpec((1, Cout_pad, 1), lambda n: (n, 0, 0)),   # per-image partial
    ]

    # VMEM budget: double-buffered in/out blocks + patch slab + weights/masks,
    # with headroom for in-kernel temporaries (x, rolled tap, acc).
    need = 4 * P * (2 * Cin_pad + 2 * Cout_pad       # dbl-buffered in/out
                    + 3 * Cin_pad                    # patch scratch
                    + 3 * Cout_pad                   # acc / acc*acc / x temps
                    + 2 * 9)                         # masks (dbl-buffered)
    need += 4 * 2 * 9 * Cin_pad * Cout_pad           # weights (dbl-buffered)
    vmem_limit = int(min(max(2 * need, 32 * 1024 * 1024), 64 * 1024 * 1024))

    return pl.pallas_call(
        kernel,
        out_shape=out_shape,
        grid_spec=pltpu.PrefetchScalarGridSpec(
            num_scalar_prefetch=0,
            grid=(N,),
            in_specs=in_specs,
            out_specs=out_specs,
            scratch_shapes=[pltpu.VMEM((3 * Cin_pad, P), jnp.float32)]),
        # Per-image BN partials -> no cross-iteration state -> parallel axis.
        compiler_params=pltpu.CompilerParams(
            dimension_semantics=("parallel",),
            vmem_limit_bytes=vmem_limit),
    )(*inputs)


def bn_relu_apply(x, scale, bias):
    """y = max(x * scale + bias, 0), channel-major (N, C, P), in place."""
    N, C, P = x.shape
    s = scale.reshape(C, 1).astype(jnp.float32)
    b = bias.reshape(C, 1).astype(jnp.float32)
    return pl.pallas_call(
        _bn_relu_kernel,
        out_shape=jax.ShapeDtypeStruct((N, C, P), x.dtype),
        grid_spec=pltpu.PrefetchScalarGridSpec(
            num_scalar_prefetch=0,
            grid=(N,),
            in_specs=[pl.BlockSpec((1, C, P), lambda n: (n, 0, 0)),
                      pl.BlockSpec((C, 1), lambda n: (0, 0)),
                      pl.BlockSpec((C, 1), lambda n: (0, 0))],
            out_specs=pl.BlockSpec((1, C, P), lambda n: (n, 0, 0))),
        compiler_params=pltpu.CompilerParams(
            dimension_semantics=("parallel",)),
        input_output_aliases={0: 0},   # reuse y2's buffer, no extra HBM alloc
    )(x, s, b)


# --------------------------------------------------------------------------
# Glue (plain JAX): pixel shuffle, masks, BN fold, parameter init
# --------------------------------------------------------------------------
def pixel_shuffle_nchw(x, r=2):
    """nn.PixelShuffle(r) on NCHW: (N, C, H, W) -> (N, C/r^2, H*r, W*r)."""
    N, C, H, W = x.shape
    Co = C // (r * r)
    x = x.reshape(N, Co, r, r, H, W)
    x = jnp.transpose(x, (0, 1, 4, 2, 5, 3))
    return x.reshape(N, Co, H * r, W * r)


def conv_tap_masks(Hs, Ws):
    """(9, Hs*Ws) f32 masks: 1 where the rolled tap stays inside the image."""
    r = np.arange(Hs)[:, None]
    c = np.arange(Ws)[None, :]
    masks = []
    for dy in range(3):
        for dx in range(3):
            oy, ox = dy - 1, dx - 1
            valid = ((r + oy >= 0) & (r + oy < Hs) &
                     (c + ox >= 0) & (c + ox < Ws))
            masks.append(valid.reshape(-1).astype(np.float32))
    return jnp.asarray(np.stack(masks, axis=0))


def fold_bn_params(ch_sum, ch_ssq, gamma, beta, count, eps=1e-5):
    """Fold training-mode BN (biased variance) into per-channel scale/bias."""
    mean = ch_sum[:, 0] / count
    var = ch_ssq[:, 0] / count - mean * mean          # E[x^2] - E[x]^2, f32
    var = jnp.maximum(var, 0.0)
    scale = gamma / jnp.sqrt(var + eps)
    bias = beta - mean * scale
    return scale, bias


def weight_to_grouped_layout(w_hwio, cin_pad, cout_pad):
    """(3, 3, Cin, Cout) HWIO -> (3, Cout_pad, 3*Cin_pad), cols ordered (dx, cin)."""
    kh, kw, cin, cout = w_hwio.shape
    w = jnp.transpose(w_hwio, (0, 3, 1, 2))           # (3, Cout, 3, Cin)
    w = jnp.pad(w, ((0, 0), (0, cout_pad - cout), (0, 0), (0, cin_pad - cin)))
    return w.reshape(kh, cout_pad, kw * cin_pad)


def pad_vec(v, n):
    return jnp.pad(v, (0, n - v.shape[0]))


def init_up_params(key, in_channels, out_channels):
    """Deterministic parameter init matching the shapes of Up.__init__."""
    c_blk = in_channels // 4 + in_channels // 2   # channels after concat
    c_mid = c_blk                                  # hold_in=True
    k1, k2 = jax.random.split(key)
    # conv weights stored HWIO (PyTorch would be OIHW)
    w1 = jax.random.uniform(k1, (3, 3, c_blk, c_mid), jnp.float32,
                            -1.0, 1.0) / np.sqrt(9 * c_blk)
    w2 = jax.random.uniform(k2, (3, 3, c_mid, out_channels), jnp.float32,
                            -1.0, 1.0) / np.sqrt(9 * c_mid)
    return dict(
        w1=w1, g1=jnp.ones((c_mid,), jnp.float32), b1=jnp.zeros((c_mid,), jnp.float32),
        w2=w2, g2=jnp.ones((out_channels,), jnp.float32), b2=jnp.zeros((out_channels,), jnp.float32),
    )


# --------------------------------------------------------------------------
# Up.forward
# --------------------------------------------------------------------------
def up_forward(params, x1_nchw, x2_nchw, eps=1e-5):
    """x1: (N, Cin, H, W) from lower block; x2: (N, Cin//2, 2H, 2W) skip."""
    N, _, H0, W0 = x1_nchw.shape
    Hs, Ws = 2 * H0, 2 * W0
    P = Hs * Ws

    x1s = pixel_shuffle_nchw(x1_nchw, 2)             # (N, Cin//4, Hs, Ws)
    C1 = x1s.shape[1]
    C2 = x2_nchw.shape[1]
    C0 = C1 + C2
    Cmid = params['w1'].shape[-1]
    Cout = params['w2'].shape[-1]

    # Pad channel counts to multiples of 8 (f32 sublane alignment).
    C0p = _round_up(C0, 8)
    Cmidp = _round_up(Cmid, 8)
    Coutp = _round_up(Cout, 8)

    # channel-major flat views (free reshapes; concat happens inside kernel 1,
    # matching torch.cat([x2, x1], dim=1)).  Zero-pad the second chunk so the
    # fused concat yields C0p aligned channels.
    xa = x2_nchw.reshape(N, C2, P)
    xb = x1s.reshape(N, C1, P)
    if C0p - C0:
        xb = jnp.pad(xb, ((0, 0), (0, C0p - C0), (0, 0)))

    masks = conv_tap_masks(Hs, Ws)
    w1k = weight_to_grouped_layout(params['w1'], C0p, Cmidp)   # (3,Cmidp,3*C0p)
    w2k = weight_to_grouped_layout(params['w2'], Cmidp, Coutp)

    g1 = pad_vec(params['g1'], Cmidp)
    b1 = pad_vec(params['b1'], Cmidp)
    g2 = pad_vec(params['g2'], Coutp)
    b2 = pad_vec(params['b2'], Coutp)

    # block 1: conv3x3 (fused concat) + per-image BN partials
    y1, s1, q1 = conv3x3_bn_stats(xa, xb, w1k, masks, None, None,
                                  Ws=Ws, Cin_pad=C0p)
    scale1, bias1 = fold_bn_params(s1.sum(axis=0), q1.sum(axis=0),
                                   g1, b1, N * P, eps)

    # block 2: (BN1+ReLU fused on input) conv3x3 + per-image BN partials
    y2, s2, q2 = conv3x3_bn_stats(y1, None, w2k, masks, scale1, bias1,
                                  Ws=Ws, Cin_pad=Cmidp)
    scale2, bias2 = fold_bn_params(s2.sum(axis=0), q2.sum(axis=0),
                                   g2, b2, N * P, eps)

    # final BN2 + ReLU (in-place lane-dense apply)
    out = bn_relu_apply(y2, scale2, bias2)           # (N, Coutp, P)
    return out[:, :Cout, :].reshape(N, Cout, Hs, Ws)  # strip channel pad


# --------------------------------------------------------------------------
# Pure-JAX reference (for correctness check only)
# --------------------------------------------------------------------------
def up_forward_ref(params, x1_nchw, x2_nchw, eps=1e-5):
    x1 = pixel_shuffle_nchw(x1_nchw, 2)
    x = jnp.concatenate([x2_nchw, x1], axis=1)
    x = jnp.transpose(x, (0, 2, 3, 1))               # NCHW -> NHWC

    def block(y, w, g, b):
        y = jax.lax.conv_general_dilated(
            y, w, (1, 1), 'SAME',
            dimension_numbers=('NHWC', 'HWIO', 'NHWC'))
        m = jnp.mean(y, axis=(0, 1, 2))
        v = jnp.mean((y - m) ** 2, axis=(0, 1, 2))
        y = (y - m) / jnp.sqrt(v + eps) * g + b
        return jnp.maximum(y, 0.0)

    y = block(x, params['w1'], params['g1'], params['b1'])
    y = block(y, params['w2'], params['g2'], params['b2'])
    return jnp.transpose(y, (0, 3, 1, 2))            # NHWC -> NCHW


if __name__ == "__main__":
    key = jax.random.PRNGKey(0)
    in_channels, out_channels = 16, 8
    N, H0, W0 = 2, 8, 8

    kx1, kx2, kp = jax.random.split(key, 3)
    x1 = jax.random.normal(kx1, (N, in_channels, H0, W0), jnp.float32)
    x2 = jax.random.normal(kx2, (N, in_channels // 2, 2 * H0, 2 * W0), jnp.float32)
    params = init_up_params(kp, in_channels, out_channels)

    fwd = jax.jit(functools.partial(up_forward, params))
    out = jax.block_until_ready(fwd(x1, x2))
    assert out.shape == (N, out_channels, 2 * H0, 2 * W0)

    ref = up_forward_ref(params, x1, x2)
    np.testing.assert_allclose(np.asarray(out), np.asarray(ref),
                               rtol=2e-4, atol=2e-4)
    print("KERNEL_OK")
</pallas_src>

<mosaic_0001>
module attributes {stable_mosaic.version = 11 : i64} {
  func.func @_conv3x3_bn_stats_kernel(%arg0: i32, %arg1: memref<1x8x256xf32, #tpu.memory_space<vmem>>, %arg2: memref<1x8x256xf32, #tpu.memory_space<vmem>>, %arg3: memref<3x16x48xf32, #tpu.memory_space<vmem>>, %arg4: memref<9x256xf32, #tpu.memory_space<vmem>>, %arg5: memref<1x16x256xf32, #tpu.memory_space<vmem>>, %arg6: memref<1x16x1xf32, #tpu.memory_space<vmem>>, %arg7: memref<1x16x1xf32, #tpu.memory_space<vmem>>, %arg8: memref<48x256xf32, #tpu.memory_space<vmem>>) attributes {dimension_semantics = [#tpu.dimension_semantics<parallel>], iteration_bounds = array<i64: 2>, scalar_prefetch = 0 : i64, scratch_operands = 1 : i64, tpu.core_type = #tpu.core_type<tc>, window_params = [{transform_indices = @transform_0, window_bounds = array<i64: 1, 8, 256>}, {transform_indices = @transform_1, window_bounds = array<i64: 1, 8, 256>}, {pipeline_mode = #tpu.pipeline_mode<synchronous>, transform_indices = @transform_2, window_bounds = array<i64: 3, 16, 48>}, {pipeline_mode = #tpu.pipeline_mode<synchronous>, transform_indices = @transform_3, window_bounds = array<i64: 9, 256>}, {transform_indices = @transform_4, window_bounds = array<i64: 1, 16, 256>}, {transform_indices = @transform_5, window_bounds = array<i64: 1, 16, 1>}, {transform_indices = @transform_6, window_bounds = array<i64: 1, 16, 1>}]} {
    %c0 = arith.constant 0 : index
    %c0_0 = arith.constant 0 : index
    %c0_1 = arith.constant 0 : index
    %0 = vector.load %arg1[%c0, %c0_0, %c0_1] : memref<1x8x256xf32, #tpu.memory_space<vmem>>, vector<1x8x256xf32>
    %1 = vector.shape_cast %0 : vector<1x8x256xf32> to vector<8x256xf32>
    %c0_2 = arith.constant 0 : index
    %c0_3 = arith.constant 0 : index
    %c0_4 = arith.constant 0 : index
    %2 = vector.load %arg2[%c0_2, %c0_3, %c0_4] : memref<1x8x256xf32, #tpu.memory_space<vmem>>, vector<1x8x256xf32>
    %3 = vector.shape_cast %2 : vector<1x8x256xf32> to vector<8x256xf32>
    %4 = tpu.concatenate %1, %3 in 0 : vector<8x256xf32>, vector<8x256xf32> -> vector<16x256xf32>
    %c17_i32 = arith.constant 17 : i32
    %5 = tpu.dynamic_rotate %4 by %c17_i32 dim 1 : vector<16x256xf32>, i32 -> vector<16x256xf32>
    %c0_5 = arith.constant 0 : index
    %c0_6 = arith.constant 0 : index
    %6 = vector.load %arg4[%c0_5, %c0_6] : memref<9x256xf32, #tpu.memory_space<vmem>>, vector<1x256xf32>
    %7 = vector.broadcast %6 : vector<1x256xf32> to vector<16x256xf32>
    %8 = arith.mulf %5, %7 : vector<16x256xf32>
    %c0_7 = arith.constant 0 : index
    %c0_8 = arith.constant 0 : index
    %9 = vector.load %arg8[%c0_7, %c0_8] : memref<48x256xf32, #tpu.memory_space<vmem>>, vector<16x256xf32>
    tpu.vector_store %arg8[%c0_7, %c0_8], %8 {strides = array<i32>} : memref<48x256xf32, #tpu.memory_space<vmem>>, vector<16x256xf32>,
    %c16_i32 = arith.constant 16 : i32
    %10 = tpu.dynamic_rotate %4 by %c16_i32 dim 1 : vector<16x256xf32>, i32 -> vector<16x256xf32>
    %c1 = arith.constant 1 : index
    %c0_9 = arith.constant 0 : index
    %11 = vector.load %arg4[%c1, %c0_9] : memref<9x256xf32, #tpu.memory_space<vmem>>, vector<1x256xf32>
    %12 = vector.broadcast %11 : vector<1x256xf32> to vector<16x256xf32>
    %13 = arith.mulf %10, %12 : vector<16x256xf32>
    %c16 = arith.constant 16 : index
    %c0_10 = arith.constant 0 : index
    %14 = vector.load %arg8[%c16, %c0_10] : memref<48x256xf32, #tpu.memory_space<vmem>>, vector<16x256xf32>
    tpu.vector_store %arg8[%c16, %c0_10], %13 {strides = array<i32>} : memref<48x256xf32, #tpu.memory_space<vmem>>, vector<16x256xf32>,
    %c15_i32 = arith.constant 15 : i32
    %15 = tpu.dynamic_rotate %4 by %c15_i32 dim 1 : vector<16x256xf32>, i32 -> vector<16x256xf32>
    %c2 = arith.constant 2 : index
    %c0_11 = arith.constant 0 : index
    %16 = vector.load %arg4[%c2, %c0_11] : memref<9x256xf32, #tpu.memory_space<vmem>>, vector<1x256xf32>
    %17 = vector.broadcast %16 : vector<1x256xf32> to vector<16x256xf32>
    %18 = arith.mulf %15, %17 : vector<16x256xf32>
    %c32 = arith.constant 32 : index
    %c0_12 = arith.constant 0 : index
    %19 = vector.load %arg8[%c32, %c0_12] : memref<48x256xf32, #tpu.memory_space<vmem>>, vector<16x256xf32>
    tpu.vector_store %arg8[%c32, %c0_12], %18 {strides = array<i32>} : memref<48x256xf32, #tpu.memory_space<vmem>>, vector<16x256xf32>,
    %c0_13 = arith.constant 0 : index
    %c0_14 = arith.constant 0 : index
    %c0_15 = arith.constant 0 : index
    %20 = vector.load %arg3[%c0_13, %c0_14, %c0_15] : memref<3x16x48xf32, #tpu.memory_space<vmem>>, vector<1x16x48xf32>
    %21 = vector.shape_cast %20 : vector<1x16x48xf32> to vector<16x48xf32>
    %c0_16 = arith.constant 0 : index
    %c0_17 = arith.constant 0 : index
    %22 = vector.load %arg8[%c0_16, %c0_17] : memref<48x256xf32, #tpu.memory_space<vmem>>, vector<48x256xf32>
    %cst = arith.constant dense<0.000000e+00> : vector<16x256xf32>
    %23 = tpu.matmul %21, %22, %cst {dimension_numbers = #tpu.dot_dimension_numbers<[1], [0], [0], [1], [0, 0, 1, 1], [], []>} : vector<16x48xf32>, vector<48x256xf32>, vector<16x256xf32> -> vector<16x256xf32>
    %c1_i32 = arith.constant 1 : i32
    %24 = tpu.dynamic_rotate %4 by %c1_i32 dim 1 : vector<16x256xf32>, i32 -> vector<16x256xf32>
    %c3 = arith.constant 3 : index
    %c0_18 = arith.constant 0 : index
    %25 = vector.load %arg4[%c3, %c0_18] : memref<9x256xf32, #tpu.memory_space<vmem>>, vector<1x256xf32>
    %26 = vector.broadcast %25 : vector<1x256xf32> to vector<16x256xf32>
    %27 = arith.mulf %24, %26 : vector<16x256xf32>
    %c0_19 = arith.constant 0 : index
    %c0_20 = arith.constant 0 : index
    %28 = vector.load %arg8[%c0_19, %c0_20] : memref<48x256xf32, #tpu.memory_space<vmem>>, vector<16x256xf32>
    tpu.vector_store %arg8[%c0_19, %c0_20], %27 {strides = array<i32>} : memref<48x256xf32, #tpu.memory_space<vmem>>, vector<16x256xf32>,
    %c16_21 = arith.constant 16 : index
    %c0_22 = arith.constant 0 : index
    %29 = vector.load %arg8[%c16_21, %c0_22] : memref<48x256xf32, #tpu.memory_space<vmem>>, vector<16x256xf32>
    tpu.vector_store %arg8[%c16_21, %c0_22], %4 {strides = array<i32>} : memref<48x256xf32, #tpu.memory_space<vmem>>, vector<16x256xf32>,
    %c255_i32 = arith.constant 255 : i32
    %30 = tpu.dynamic_rotate %4 by %c255_i32 dim 1 : vector<16x256xf32>, i32 -> vector<16x256xf32>
    %c5 = arith.constant 5 : index
    %c0_23 = arith.constant 0 : index
    %31 = vector.load %arg4[%c5, %c0_23] : memref<9x256xf32, #tpu.memory_space<vmem>>, vector<1x256xf32>
    %32 = vector.broadcast %31 : vector<1x256xf32> to vector<16x256xf32>
    %33 = arith.mulf %30, %32 : vector<16x256xf32>
    %c32_24 = arith.constant 32 : index
    %c0_25 = arith.constant 0 : index
    %34 = vector.load %arg8[%c32_24, %c0_25] : memref<48x256xf32, #tpu.memory_space<vmem>>, vector<16x256xf32>
    tpu.vector_store %arg8[%c32_24, %c0_25], %33 {strides = array<i32>} : memref<48x256xf32, #tpu.memory_space<vmem>>, vector<16x256xf32>,
    %c1_26 = arith.constant 1 : index
    %c0_27 = arith.constant 0 : index
    %c0_28 = arith.constant 0 : index
    %35 = vector.load %arg3[%c1_26, %c0_27, %c0_28] : memref<3x16x48xf32, #tpu.memory_space<vmem>>, vector<1x16x48xf32>
    %36 = vector.shape_cast %35 : vector<1x16x48xf32> to vector<16x48xf32>
    %c0_29 = arith.constant 0 : index
    %c0_30 = arith.constant 0 : index
    %37 = vector.load %arg8[%c0_29, %c0_30] : memref<48x256xf32, #tpu.memory_space<vmem>>, vector<48x256xf32>
    %cst_31 = arith.constant dense<0.000000e+00> : vector<16x256xf32>
    %38 = tpu.matmul %36, %37, %cst_31 {dimension_numbers = #tpu.dot_dimension_numbers<[1], [0], [0], [1], [0, 0, 1, 1], [], []>} : vector<16x48xf32>, vector<48x256xf32>, vector<16x256xf32> -> vector<16x256xf32>
    %39 = arith.addf %23, %38 : vector<16x256xf32>
    %c241_i32 = arith.constant 241 : i32
    %40 = tpu.dynamic_rotate %4 by %c241_i32 dim 1 : vector<16x256xf32>, i32 -> vector<16x256xf32>
    %c6 = arith.constant 6 : index
    %c0_32 = arith.constant 0 : index
    %41 = vector.load %arg4[%c6, %c0_32] : memref<9x256xf32, #tpu.memory_space<vmem>>, vector<1x256xf32>
    %42 = vector.broadcast %41 : vector<1x256xf32> to vector<16x256xf32>
    %43 = arith.mulf %40, %42 : vector<16x256xf32>
    %c0_33 = arith.constant 0 : index
    %c0_34 = arith.constant 0 : index
    %44 = vector.load %arg8[%c0_33, %c0_34] : memref<48x256xf32, #tpu.memory_space<vmem>>, vector<16x256xf32>
    tpu.vector_store %arg8[%c0_33, %c0_34], %43 {strides = array<i32>} : memref<48x256xf32, #tpu.memory_space<vmem>>, vector<16x256xf32>,
    %c240_i32 = arith.constant 240 : i32
    %45 = tpu.dynamic_rotate %4 by %c240_i32 dim 1 : vector<16x256xf32>, i32 -> vector<16x256xf32>
    %c7 = arith.constant 7 : index
    %c0_35 = arith.constant 0 : index
    %46 = vector.load %arg4[%c7, %c0_35] : memref<9x256xf32, #tpu.memory_space<vmem>>, vector<1x256xf32>
    %47 = vector.broadcast %46 : vector<1x256xf32> to vector<16x256xf32>
    %48 = arith.mulf %45, %47 : vector<16x256xf32>
    %c16_36 = arith.constant 16 : index
    %c0_37 = arith.constant 0 : index
    %49 = vector.load %arg8[%c16_36, %c0_37] : memref<48x256xf32, #tpu.memory_space<vmem>>, vector<16x256xf32>
    tpu.vector_store %arg8[%c16_36, %c0_37], %48 {strides = array<i32>} : memref<48x256xf32, #tpu.memory_space<vmem>>, vector<16x256xf32>,
    %c239_i32 = arith.constant 239 : i32
    %50 = tpu.dynamic_rotate %4 by %c239_i32 dim 1 : vector<16x256xf32>, i32 -> vector<16x256xf32>
    %c8 = arith.constant 8 : index
    %c0_38 = arith.constant 0 : index
    %51 = vector.load %arg4[%c8, %c0_38] : memref<9x256xf32, #tpu.memory_space<vmem>>, vector<1x256xf32>
    %52 = vector.broadcast %51 : vector<1x256xf32> to vector<16x256xf32>
    %53 = arith.mulf %50, %52 : vector<16x256xf32>
    %c32_39 = arith.constant 32 : index
    %c0_40 = arith.constant 0 : index
    %54 = vector.load %arg8[%c32_39, %c0_40] : memref<48x256xf32, #tpu.memory_space<vmem>>, vector<16x256xf32>
    tpu.vector_store %arg8[%c32_39, %c0_40], %53 {strides = array<i32>} : memref<48x256xf32, #tpu.memory_space<vmem>>, vector<16x256xf32>,
    %c2_41 = arith.constant 2 : index
    %c0_42 = arith.constant 0 : index
    %c0_43 = arith.constant 0 : index
    %55 = vector.load %arg3[%c2_41, %c0_42, %c0_43] : memref<3x16x48xf32, #tpu.memory_space<vmem>>, vector<1x16x48xf32>
    %56 = vector.shape_cast %55 : vector<1x16x48xf32> to vector<16x48xf32>
    %c0_44 = arith.constant 0 : index
    %c0_45 = arith.constant 0 : index
    %57 = vector.load %arg8[%c0_44, %c0_45] : memref<48x256xf32, #tpu.memory_space<vmem>>, vector<48x256xf32>
    %cst_46 = arith.constant dense<0.000000e+00> : vector<16x256xf32>
    %58 = tpu.matmul %56, %57, %cst_46 {dimension_numbers = #tpu.dot_dimension_numbers<[1], [0], [0], [1], [0, 0, 1, 1], [], []>} : vector<16x48xf32>, vector<48x256xf32>, vector<16x256xf32> -> vector<16x256xf32>
    %59 = arith.addf %39, %58 : vector<16x256xf32>
    %c0_47 = arith.constant 0 : index
    %c0_48 = arith.constant 0 : index
    %c0_49 = arith.constant 0 : index
    %60 = vector.load %arg5[%c0_47, %c0_48, %c0_49] : memref<1x16x256xf32, #tpu.memory_space<vmem>>, vector<1x16x256xf32>
    %61 = vector.shape_cast %60 : vector<1x16x256xf32> to vector<16x256xf32>
    %62 = vector.shape_cast %59 : vector<16x256xf32> to vector<1x16x256xf32>
    tpu.vector_store %arg5[%c0_47, %c0_48, %c0_49], %62 {strides = array<i32>} : memref<1x16x256xf32, #tpu.memory_space<vmem>>, vector<1x16x256xf32>,
    %cst_50 = arith.constant 1.000000e+00 : f32
    %63 = vector.broadcast %cst_50 : f32 to vector<256x1xf32>
    %cst_51 = arith.constant dense<0.000000e+00> : vector<16x1xf32>
    %64 = tpu.matmul %59, %63, %cst_51 {dimension_numbers = #tpu.dot_dimension_numbers<[1], [0], [0], [1], [0, 0, 1, 1], [], []>} : vector<16x256xf32>, vector<256x1xf32>, vector<16x1xf32> -> vector<16x1xf32>
    %c0_52 = arith.constant 0 : index
    %c0_53 = arith.constant 0 : index
    %c0_54 = arith.constant 0 : index
    %65 = vector.load %arg6[%c0_52, %c0_53, %c0_54] : memref<1x16x1xf32, #tpu.memory_space<vmem>>, vector<1x16x1xf32>
    %66 = vector.shape_cast %65 : vector<1x16x1xf32> to vector<16x1xf32>
    %67 = vector.shape_cast %64 : vector<16x1xf32> to vector<1x16x1xf32>
    tpu.vector_store %arg6[%c0_52, %c0_53, %c0_54], %67 {strides = array<i32>} : memref<1x16x1xf32, #tpu.memory_space<vmem>>, vector<1x16x1xf32>,
    %68 = arith.mulf %59, %59 : vector<16x256xf32>
    %cst_55 = arith.constant dense<0.000000e+00> : vector<16x1xf32>
    %69 = tpu.matmul %68, %63, %cst_55 {dimension_numbers = #tpu.dot_dimension_numbers<[1], [0], [0], [1], [0, 0, 1, 1], [], []>} : vector<16x256xf32>, vector<256x1xf32>, vector<16x1xf32> -> vector<16x1xf32>
    %c0_56 = arith.constant 0 : index
    %c0_57 = arith.constant 0 : index
    %c0_58 = arith.constant 0 : index
    %70 = vector.load %arg7[%c0_56, %c0_57, %c0_58] : memref<1x16x1xf32, #tpu.memory_space<vmem>>, vector<1x16x1xf32>
    %71 = vector.shape_cast %70 : vector<1x16x1xf32> to vector<16x1xf32>
    %72 = vector.shape_cast %69 : vector<16x1xf32> to vector<1x16x1xf32>
    tpu.vector_store %arg7[%c0_56, %c0_57, %c0_58], %72 {strides = array<i32>} : memref<1x16x1xf32, #tpu.memory_space<vmem>>, vector<1x16x1xf32>,
    return
  }
  func.func @transform_0(%arg0: i32) -> (i32, i32, i32) {
    %c0_i32 = arith.constant 0 : i32
    %c0_i32_0 = arith.constant 0 : i32
    %c0_i32_1 = arith.constant 0 : i32
    return %arg0, %c0_i32, %c0_i32_0 : i32, i32, i32
  }
  func.func @transform_1(%arg0: i32) -> (i32, i32, i32) {
    %c0_i32 = arith.constant 0 : i32
    %c0_i32_0 = arith.constant 0 : i32
    %c0_i32_1 = arith.constant 0 : i32
    return %arg0, %c0_i32, %c0_i32_0 : i32, i32, i32
  }
  func.func @transform_2(%arg0: i32) -> (i32, i32, i32) {
    %c0_i32 = arith.constant 0 : i32
    %c0_i32_0 = arith.constant 0 : i32
    %c0_i32_1 = arith.constant 0 : i32
    %c0_i32_2 = arith.constant 0 : i32
    return %c0_i32, %c0_i32_0, %c0_i32_1 : i32, i32, i32
  }
  func.func @transform_3(%arg0: i32) -> (i32, i32) {
    %c0_i32 = arith.constant 0 : i32
    %c0_i32_0 = arith.constant 0 : i32
    %c0_i32_1 = arith.constant 0 : i32
    return %c0_i32, %c0_i32_0 : i32, i32
  }
  func.func @transform_4(%arg0: i32) -> (i32, i32, i32) {
    %c0_i32 = arith.constant 0 : i32
    %c0_i32_0 = arith.constant 0 : i32
    %c0_i32_1 = arith.constant 0 : i32
    return %arg0, %c0_i32, %c0_i32_0 : i32, i32, i32
  }
  func.func @transform_5(%arg0: i32) -> (i32, i32, i32) {
    %c0_i32 = arith.constant 0 : i32
    %c0_i32_0 = arith.constant 0 : i32
    %c0_i32_1 = arith.constant 0 : i32
    return %arg0, %c0_i32, %c0_i32_0 : i32, i32, i32
  }
  func.func @transform_6(%arg0: i32) -> (i32, i32, i32) {
    %c0_i32 = arith.constant 0 : i32
    %c0_i32_0 = arith.constant 0 : i32
    %c0_i32_1 = arith.constant 0 : i32
    return %arg0, %c0_i32, %c0_i32_0 : i32, i32, i32
  }
}

module attributes {stable_mosaic.version = 11 : i64} {
  func.func @_conv3x3_bn_stats_kernel(%arg0: i32, %arg1: memref<1x16x256xf32, #tpu.memory_space<vmem>>, %arg2: memref<16x1xf32, #tpu.memory_space<vmem>>, %arg3: memref<16x1xf32, #tpu.memory_space<vmem>>, %arg4: memref<3x8x48xf32, #tpu.memory_space<vmem>>, %arg5: memref<9x256xf32, #tpu.memory_space<vmem>>, %arg6: memref<1x8x256xf32, #tpu.memory_space<vmem>>, %arg7: memref<1x8x1xf32, #tpu.memory_space<vmem>>, %arg8: memref<1x8x1xf32, #tpu.memory_space<vmem>>, %arg9: memref<48x256xf32, #tpu.memory_space<vmem>>) attributes {dimension_semantics = [#tpu.dimension_semantics<parallel>], iteration_bounds = array<i64: 2>, scalar_prefetch = 0 : i64, scratch_operands = 1 : i64, tpu.core_type = #tpu.core_type<tc>, window_params = [{transform_indices = @transform_0, window_bounds = array<i64: 1, 16, 256>}, {pipeline_mode = #tpu.pipeline_mode<synchronous>, transform_indices = @transform_1, window_bounds = array<i64: 16, 1>}, {pipeline_mode = #tpu.pipeline_mode<synchronous>, transform_indices = @transform_2, window_bounds = array<i64: 16, 1>}, {pipeline_mode = #tpu.pipeline_mode<synchronous>, transform_indices = @transform_3, window_bounds = array<i64: 3, 8, 48>}, {pipeline_mode = #tpu.pipeline_mode<synchronous>, transform_indices = @transform_4, window_bounds = array<i64: 9, 256>}, {transform_indices = @transform_5, window_bounds = array<i64: 1, 8, 256>}, {transform_indices = @transform_6, window_bounds = array<i64: 1, 8, 1>}, {transform_indices = @transform_7, window_bounds = array<i64: 1, 8, 1>}]} {
    %c0 = arith.constant 0 : index
    %c0_0 = arith.constant 0 : index
    %c0_1 = arith.constant 0 : index
    %0 = vector.load %arg1[%c0, %c0_0, %c0_1] : memref<1x16x256xf32, #tpu.memory_space<vmem>>, vector<1x16x256xf32>
    %1 = vector.shape_cast %0 : vector<1x16x256xf32> to vector<16x256xf32>
    %c0_2 = arith.constant 0 : index
    %c0_3 = arith.constant 0 : index
    %2 = vector.load %arg2[%c0_2, %c0_3] : memref<16x1xf32, #tpu.memory_space<vmem>>, vector<16x1xf32>
    %3 = vector.broadcast %2 : vector<16x1xf32> to vector<16x256xf32>
    %4 = arith.mulf %1, %3 : vector<16x256xf32>
    %c0_4 = arith.constant 0 : index
    %c0_5 = arith.constant 0 : index
    %5 = vector.load %arg3[%c0_4, %c0_5] : memref<16x1xf32, #tpu.memory_space<vmem>>, vector<16x1xf32>
    %6 = vector.broadcast %5 : vector<16x1xf32> to vector<16x256xf32>
    %7 = arith.addf %4, %6 : vector<16x256xf32>
    %cst = arith.constant 0.000000e+00 : f32
    %8 = vector.broadcast %cst : f32 to vector<16x256xf32>
    %9 = arith.maximumf %7, %8 : vector<16x256xf32>
    %c17_i32 = arith.constant 17 : i32
    %10 = tpu.dynamic_rotate %9 by %c17_i32 dim 1 : vector<16x256xf32>, i32 -> vector<16x256xf32>
    %c0_6 = arith.constant 0 : index
    %c0_7 = arith.constant 0 : index
    %11 = vector.load %arg5[%c0_6, %c0_7] : memref<9x256xf32, #tpu.memory_space<vmem>>, vector<1x256xf32>
    %12 = vector.broadcast %11 : vector<1x256xf32> to vector<16x256xf32>
    %13 = arith.mulf %10, %12 : vector<16x256xf32>
    %c0_8 = arith.constant 0 : index
    %c0_9 = arith.constant 0 : index
    %14 = vector.load %arg9[%c0_8, %c0_9] : memref<48x256xf32, #tpu.memory_space<vmem>>, vector<16x256xf32>
    tpu.vector_store %arg9[%c0_8, %c0_9], %13 {strides = array<i32>} : memref<48x256xf32, #tpu.memory_space<vmem>>, vector<16x256xf32>,
    %c16_i32 = arith.constant 16 : i32
    %15 = tpu.dynamic_rotate %9 by %c16_i32 dim 1 : vector<16x256xf32>, i32 -> vector<16x256xf32>
    %c1 = arith.constant 1 : index
    %c0_10 = arith.constant 0 : index
    %16 = vector.load %arg5[%c1, %c0_10] : memref<9x256xf32, #tpu.memory_space<vmem>>, vector<1x256xf32>
    %17 = vector.broadcast %16 : vector<1x256xf32> to vector<16x256xf32>
    %18 = arith.mulf %15, %17 : vector<16x256xf32>
    %c16 = arith.constant 16 : index
    %c0_11 = arith.constant 0 : index
    %19 = vector.load %arg9[%c16, %c0_11] : memref<48x256xf32, #tpu.memory_space<vmem>>, vector<16x256xf32>
    tpu.vector_store %arg9[%c16, %c0_11], %18 {strides = array<i32>} : memref<48x256xf32, #tpu.memory_space<vmem>>, vector<16x256xf32>,
    %c15_i32 = arith.constant 15 : i32
    %20 = tpu.dynamic_rotate %9 by %c15_i32 dim 1 : vector<16x256xf32>, i32 -> vector<16x256xf32>
    %c2 = arith.constant 2 : index
    %c0_12 = arith.constant 0 : index
    %21 = vector.load %arg5[%c2, %c0_12] : memref<9x256xf32, #tpu.memory_space<vmem>>, vector<1x256xf32>
    %22 = vector.broadcast %21 : vector<1x256xf32> to vector<16x256xf32>
    %23 = arith.mulf %20, %22 : vector<16x256xf32>
    %c32 = arith.constant 32 : index
    %c0_13 = arith.constant 0 : index
    %24 = vector.load %arg9[%c32, %c0_13] : memref<48x256xf32, #tpu.memory_space<vmem>>, vector<16x256xf32>
    tpu.vector_store %arg9[%c32, %c0_13], %23 {strides = array<i32>} : memref<48x256xf32, #tpu.memory_space<vmem>>, vector<16x256xf32>,
    %c0_14 = arith.constant 0 : index
    %c0_15 = arith.constant 0 : index
    %c0_16 = arith.constant 0 : index
    %25 = vector.load %arg4[%c0_14, %c0_15, %c0_16] : memref<3x8x48xf32, #tpu.memory_space<vmem>>, vector<1x8x48xf32>
    %26 = vector.shape_cast %25 : vector<1x8x48xf32> to vector<8x48xf32>
    %c0_17 = arith.constant 0 : index
    %c0_18 = arith.constant 0 : index
    %27 = vector.load %arg9[%c0_17, %c0_18] : memref<48x256xf32, #tpu.memory_space<vmem>>, vector<48x256xf32>
    %cst_19 = arith.constant dense<0.000000e+00> : vector<8x256xf32>
    %28 = tpu.matmul %26, %27, %cst_19 {dimension_numbers = #tpu.dot_dimension_numbers<[1], [0], [0], [1], [0, 0, 1, 1], [], []>} : vector<8x48xf32>, vector<48x256xf32>, vector<8x256xf32> -> vector<8x256xf32>
    %c1_i32 = arith.constant 1 : i32
    %29 = tpu.dynamic_rotate %9 by %c1_i32 dim 1 : vector<16x256xf32>, i32 -> vector<16x256xf32>
    %c3 = arith.constant 3 : index
    %c0_20 = arith.constant 0 : index
    %30 = vector.load %arg5[%c3, %c0_20] : memref<9x256xf32, #tpu.memory_space<vmem>>, vector<1x256xf32>
    %31 = vector.broadcast %30 : vector<1x256xf32> to vector<16x256xf32>
    %32 = arith.mulf %29, %31 : vector<16x256xf32>
    %c0_21 = arith.constant 0 : index
    %c0_22 = arith.constant 0 : index
    %33 = vector.load %arg9[%c0_21, %c0_22] : memref<48x256xf32, #tpu.memory_space<vmem>>, vector<16x256xf32>
    tpu.vector_store %arg9[%c0_21, %c0_22], %32 {strides = array<i32>} : memref<48x256xf32, #tpu.memory_space<vmem>>, vector<16x256xf32>,
    %c16_23 = arith.constant 16 : index
    %c0_24 = arith.constant 0 : index
    %34 = vector.load %arg9[%c16_23, %c0_24] : memref<48x256xf32, #tpu.memory_space<vmem>>, vector<16x256xf32>
    tpu.vector_store %arg9[%c16_23, %c0_24], %9 {strides = array<i32>} : memref<48x256xf32, #tpu.memory_space<vmem>>, vector<16x256xf32>,
    %c255_i32 = arith.constant 255 : i32
    %35 = tpu.dynamic_rotate %9 by %c255_i32 dim 1 : vector<16x256xf32>, i32 -> vector<16x256xf32>
    %c5 = arith.constant 5 : index
    %c0_25 = arith.constant 0 : index
    %36 = vector.load %arg5[%c5, %c0_25] : memref<9x256xf32, #tpu.memory_space<vmem>>, vector<1x256xf32>
    %37 = vector.broadcast %36 : vector<1x256xf32> to vector<16x256xf32>
    %38 = arith.mulf %35, %37 : vector<16x256xf32>
    %c32_26 = arith.constant 32 : index
    %c0_27 = arith.constant 0 : index
    %39 = vector.load %arg9[%c32_26, %c0_27] : memref<48x256xf32, #tpu.memory_space<vmem>>, vector<16x256xf32>
    tpu.vector_store %arg9[%c32_26, %c0_27], %38 {strides = array<i32>} : memref<48x256xf32, #tpu.memory_space<vmem>>, vector<16x256xf32>,
    %c1_28 = arith.constant 1 : index
    %c0_29 = arith.constant 0 : index
    %c0_30 = arith.constant 0 : index
    %40 = vector.load %arg4[%c1_28, %c0_29, %c0_30] : memref<3x8x48xf32, #tpu.memory_space<vmem>>, vector<1x8x48xf32>
    %41 = vector.shape_cast %40 : vector<1x8x48xf32> to vector<8x48xf32>
    %c0_31 = arith.constant 0 : index
    %c0_32 = arith.constant 0 : index
    %42 = vector.load %arg9[%c0_31, %c0_32] : memref<48x256xf32, #tpu.memory_space<vmem>>, vector<48x256xf32>
    %cst_33 = arith.constant dense<0.000000e+00> : vector<8x256xf32>
    %43 = tpu.matmul %41, %42, %cst_33 {dimension_numbers = #tpu.dot_dimension_numbers<[1], [0], [0], [1], [0, 0, 1, 1], [], []>} : vector<8x48xf32>, vector<48x256xf32>, vector<8x256xf32> -> vector<8x256xf32>
    %44 = arith.addf %28, %43 : vector<8x256xf32>
    %c241_i32 = arith.constant 241 : i32
    %45 = tpu.dynamic_rotate %9 by %c241_i32 dim 1 : vector<16x256xf32>, i32 -> vector<16x256xf32>
    %c6 = arith.constant 6 : index
    %c0_34 = arith.constant 0 : index
    %46 = vector.load %arg5[%c6, %c0_34] : memref<9x256xf32, #tpu.memory_space<vmem>>, vector<1x256xf32>
    %47 = vector.broadcast %46 : vector<1x256xf32> to vector<16x256xf32>
    %48 = arith.mulf %45, %47 : vector<16x256xf32>
    %c0_35 = arith.constant 0 : index
    %c0_36 = arith.constant 0 : index
    %49 = vector.load %arg9[%c0_35, %c0_36] : memref<48x256xf32, #tpu.memory_space<vmem>>, vector<16x256xf32>
    tpu.vector_store %arg9[%c0_35, %c0_36], %48 {strides = array<i32>} : memref<48x256xf32, #tpu.memory_space<vmem>>, vector<16x256xf32>,
    %c240_i32 = arith.constant 240 : i32
    %50 = tpu.dynamic_rotate %9 by %c240_i32 dim 1 : vector<16x256xf32>, i32 -> vector<16x256xf32>
    %c7 = arith.constant 7 : index
    %c0_37 = arith.constant 0 : index
    %51 = vector.load %arg5[%c7, %c0_37] : memref<9x256xf32, #tpu.memory_space<vmem>>, vector<1x256xf32>
    %52 = vector.broadcast %51 : vector<1x256xf32> to vector<16x256xf32>
    %53 = arith.mulf %50, %52 : vector<16x256xf32>
    %c16_38 = arith.constant 16 : index
    %c0_39 = arith.constant 0 : index
    %54 = vector.load %arg9[%c16_38, %c0_39] : memref<48x256xf32, #tpu.memory_space<vmem>>, vector<16x256xf32>
    tpu.vector_store %arg9[%c16_38, %c0_39], %53 {strides = array<i32>} : memref<48x256xf32, #tpu.memory_space<vmem>>, vector<16x256xf32>,
    %c239_i32 = arith.constant 239 : i32
    %55 = tpu.dynamic_rotate %9 by %c239_i32 dim 1 : vector<16x256xf32>, i32 -> vector<16x256xf32>
    %c8 = arith.constant 8 : index
    %c0_40 = arith.constant 0 : index
    %56 = vector.load %arg5[%c8, %c0_40] : memref<9x256xf32, #tpu.memory_space<vmem>>, vector<1x256xf32>
    %57 = vector.broadcast %56 : vector<1x256xf32> to vector<16x256xf32>
    %58 = arith.mulf %55, %57 : vector<16x256xf32>
    %c32_41 = arith.constant 32 : index
    %c0_42 = arith.constant 0 : index
    %59 = vector.load %arg9[%c32_41, %c0_42] : memref<48x256xf32, #tpu.memory_space<vmem>>, vector<16x256xf32>
    tpu.vector_store %arg9[%c32_41, %c0_42], %58 {strides = array<i32>} : memref<48x256xf32, #tpu.memory_space<vmem>>, vector<16x256xf32>,
    %c2_43 = arith.constant 2 : index
    %c0_44 = arith.constant 0 : index
    %c0_45 = arith.constant 0 : index
    %60 = vector.load %arg4[%c2_43, %c0_44, %c0_45] : memref<3x8x48xf32, #tpu.memory_space<vmem>>, vector<1x8x48xf32>
    %61 = vector.shape_cast %60 : vector<1x8x48xf32> to vector<8x48xf32>
    %c0_46 = arith.constant 0 : index
    %c0_47 = arith.constant 0 : index
    %62 = vector.load %arg9[%c0_46, %c0_47] : memref<48x256xf32, #tpu.memory_space<vmem>>, vector<48x256xf32>
    %cst_48 = arith.constant dense<0.000000e+00> : vector<8x256xf32>
    %63 = tpu.matmul %61, %62, %cst_48 {dimension_numbers = #tpu.dot_dimension_numbers<[1], [0], [0], [1], [0, 0, 1, 1], [], []>} : vector<8x48xf32>, vector<48x256xf32>, vector<8x256xf32> -> vector<8x256xf32>
    %64 = arith.addf %44, %63 : vector<8x256xf32>
    %c0_49 = arith.constant 0 : index
    %c0_50 = arith.constant 0 : index
    %c0_51 = arith.constant 0 : index
    %65 = vector.load %arg6[%c0_49, %c0_50, %c0_51] : memref<1x8x256xf32, #tpu.memory_space<vmem>>, vector<1x8x256xf32>
    %66 = vector.shape_cast %65 : vector<1x8x256xf32> to vector<8x256xf32>
    %67 = vector.shape_cast %64 : vector<8x256xf32> to vector<1x8x256xf32>
    tpu.vector_store %arg6[%c0_49, %c0_50, %c0_51], %67 {strides = array<i32>} : memref<1x8x256xf32, #tpu.memory_space<vmem>>, vector<1x8x256xf32>,
    %cst_52 = arith.constant 1.000000e+00 : f32
    %68 = vector.broadcast %cst_52 : f32 to vector<256x1xf32>
    %cst_53 = arith.constant dense<0.000000e+00> : vector<8x1xf32>
    %69 = tpu.matmul %64, %68, %cst_53 {dimension_numbers = #tpu.dot_dimension_numbers<[1], [0], [0], [1], [0, 0, 1, 1], [], []>} : vector<8x256xf32>, vector<256x1xf32>, vector<8x1xf32> -> vector<8x1xf32>
    %c0_54 = arith.constant 0 : index
    %c0_55 = arith.constant 0 : index
    %c0_56 = arith.constant 0 : index
    %70 = vector.load %arg7[%c0_54, %c0_55, %c0_56] : memref<1x8x1xf32, #tpu.memory_space<vmem>>, vector<1x8x1xf32>
    %71 = vector.shape_cast %70 : vector<1x8x1xf32> to vector<8x1xf32>
    %72 = vector.shape_cast %69 : vector<8x1xf32> to vector<1x8x1xf32>
    tpu.vector_store %arg7[%c0_54, %c0_55, %c0_56], %72 {strides = array<i32>} : memref<1x8x1xf32, #tpu.memory_space<vmem>>, vector<1x8x1xf32>,
    %73 = arith.mulf %64, %64 : vector<8x256xf32>
    %cst_57 = arith.constant dense<0.000000e+00> : vector<8x1xf32>
    %74 = tpu.matmul %73, %68, %cst_57 {dimension_numbers = #tpu.dot_dimension_numbers<[1], [0], [0], [1], [0, 0, 1, 1], [], []>} : vector<8x256xf32>, vector<256x1xf32>, vector<8x1xf32> -> vector<8x1xf32>
    %c0_58 = arith.constant 0 : index
    %c0_59 = arith.constant 0 : index
    %c0_60 = arith.constant 0 : index
    %75 = vector.load %arg8[%c0_58, %c0_59, %c0_60] : memref<1x8x1xf32, #tpu.memory_space<vmem>>, vector<1x8x1xf32>
    %76 = vector.shape_cast %75 : vector<1x8x1xf32> to vector<8x1xf32>
    %77 = vector.shape_cast %74 : vector<8x1xf32> to vector<1x8x1xf32>
    tpu.vector_store %arg8[%c0_58, %c0_59, %c0_60], %77 {strides = array<i32>} : memref<1x8x1xf32, #tpu.memory_space<vmem>>, vector<1x8x1xf32>,
    return
  }
  func.func @transform_0(%arg0: i32) -> (i32, i32, i32) {
    %c0_i32 = arith.constant 0 : i32
    %c0_i32_0 = arith.constant 0 : i32
    %c0_i32_1 = arith.constant 0 : i32
    return %arg0, %c0_i32, %c0_i32_0 : i32, i32, i32
  }
  func.func @transform_1(%arg0: i32) -> (i32, i32) {
    %c0_i32 = arith.constant 0 : i32
    %c0_i32_0 = arith.constant 0 : i32
    %c0_i32_1 = arith.constant 0 : i32
    return %c0_i32, %c0_i32_0 : i32, i32
  }
  func.func @transform_2(%arg0: i32) -> (i32, i32) {
    %c0_i32 = arith.constant 0 : i32
    %c0_i32_0 = arith.constant 0 : i32
    %c0_i32_1 = arith.constant 0 : i32
    return %c0_i32, %c0_i32_0 : i32, i32
  }
  func.func @transform_3(%arg0: i32) -> (i32, i32, i32) {
    %c0_i32 = arith.constant 0 : i32
    %c0_i32_0 = arith.constant 0 : i32
    %c0_i32_1 = arith.constant 0 : i32
    %c0_i32_2 = arith.constant 0 : i32
    return %c0_i32, %c0_i32_0, %c0_i32_1 : i32, i32, i32
  }
  func.func @transform_4(%arg0: i32) -> (i32, i32) {
    %c0_i32 = arith.constant 0 : i32
    %c0_i32_0 = arith.constant 0 : i32
    %c0_i32_1 = arith.constant 0 : i32
    return %c0_i32, %c0_i32_0 : i32, i32
  }
  func.func @transform_5(%arg0: i32) -> (i32, i32, i32) {
    %c0_i32 = arith.constant 0 : i32
    %c0_i32_0 = arith.constant 0 : i32
    %c0_i32_1 = arith.constant 0 : i32
    return %arg0, %c0_i32, %c0_i32_0 : i32, i32, i32
  }
  func.func @transform_6(%arg0: i32) -> (i32, i32, i32) {
    %c0_i32 = arith.constant 0 : i32
    %c0_i32_0 = arith.constant 0 : i32
    %c0_i32_1 = arith.constant 0 : i32
    return %arg0, %c0_i32, %c0_i32_0 : i32, i32, i32
  }
  func.func @transform_7(%arg0: i32) -> (i32, i32, i32) {
    %c0_i32 = arith.constant 0 : i32
    %c0_i32_0 = arith.constant 0 : i32
    %c0_i32_1 = arith.constant 0 : i32
    return %arg0, %c0_i32, %c0_i32_0 : i32, i32, i32
  }
}

module attributes {stable_mosaic.version = 11 : i64} {
  func.func @_bn_relu_kernel(%arg0: i32, %arg1: memref<1x8x256xf32, #tpu.memory_space<vmem>>, %arg2: memref<8x1xf32, #tpu.memory_space<vmem>>, %arg3: memref<8x1xf32, #tpu.memory_space<vmem>>, %arg4: memref<1x8x256xf32, #tpu.memory_space<vmem>>) attributes {dimension_semantics = [#tpu.dimension_semantics<parallel>], iteration_bounds = array<i64: 2>, scalar_prefetch = 0 : i64, scratch_operands = 0 : i64, tpu.core_type = #tpu.core_type<tc>, window_params = [{transform_indices = @transform_0, window_bounds = array<i64: 1, 8, 256>}, {pipeline_mode = #tpu.pipeline_mode<synchronous>, transform_indices = @transform_1, window_bounds = array<i64: 8, 1>}, {pipeline_mode = #tpu.pipeline_mode<synchronous>, transform_indices = @transform_2, window_bounds = array<i64: 8, 1>}, {transform_indices = @transform_3, window_bounds = array<i64: 1, 8, 256>}]} {
    %c0 = arith.constant 0 : index
    %c0_0 = arith.constant 0 : index
    %c0_1 = arith.constant 0 : index
    %0 = vector.load %arg1[%c0, %c0_0, %c0_1] : memref<1x8x256xf32, #tpu.memory_space<vmem>>, vector<1x8x256xf32>
    %1 = vector.shape_cast %0 : vector<1x8x256xf32> to vector<8x256xf32>
    %c0_2 = arith.constant 0 : index
    %c0_3 = arith.constant 0 : index
    %2 = vector.load %arg2[%c0_2, %c0_3] : memref<8x1xf32, #tpu.memory_space<vmem>>, vector<8x1xf32>
    %3 = vector.broadcast %2 : vector<8x1xf32> to vector<8x256xf32>
    %4 = arith.mulf %1, %3 : vector<8x256xf32>
    %c0_4 = arith.constant 0 : index
    %c0_5 = arith.constant 0 : index
    %5 = vector.load %arg3[%c0_4, %c0_5] : memref<8x1xf32, #tpu.memory_space<vmem>>, vector<8x1xf32>
    %6 = vector.broadcast %5 : vector<8x1xf32> to vector<8x256xf32>
    %7 = arith.addf %4, %6 : vector<8x256xf32>
    %cst = arith.constant 0.000000e+00 : f32
    %8 = vector.broadcast %cst : f32 to vector<8x256xf32>
    %9 = arith.maximumf %7, %8 : vector<8x256xf32>
    %c0_6 = arith.constant 0 : index
    %c0_7 = arith.constant 0 : index
    %c0_8 = arith.constant 0 : index
    %10 = vector.load %arg4[%c0_6, %c0_7, %c0_8] : memref<1x8x256xf32, #tpu.memory_space<vmem>>, vector<1x8x256xf32>
    %11 = vector.shape_cast %10 : vector<1x8x256xf32> to vector<8x256xf32>
    %12 = vector.shape_cast %9 : vector<8x256xf32> to vector<1x8x256xf32>
    tpu.vector_store %arg4[%c0_6, %c0_7, %c0_8], %12 {strides = array<i32>} : memref<1x8x256xf32, #tpu.memory_space<vmem>>, vector<1x8x256xf32>,
    return
  }
  func.func @transform_0(%arg0: i32) -> (i32, i32, i32) {
    %c0_i32 = arith.constant 0 : i32
    %c0_i32_0 = arith.constant 0 : i32
    %c0_i32_1 = arith.constant 0 : i32
    return %arg0, %c0_i32, %c0_i32_0 : i32, i32, i32
  }
  func.func @transform_1(%arg0: i32) -> (i32, i32) {
    %c0_i32 = arith.constant 0 : i32
    %c0_i32_0 = arith.constant 0 : i32
    %c0_i32_1 = arith.constant 0 : i32
    return %c0_i32, %c0_i32_0 : i32, i32
  }
  func.func @transform_2(%arg0: i32) -> (i32, i32) {
    %c0_i32 = arith.constant 0 : i32
    %c0_i32_0 = arith.constant 0 : i32
    %c0_i32_1 = arith.constant 0 : i32
    return %c0_i32, %c0_i32_0 : i32, i32
  }
  func.func @transform_3(%arg0: i32) -> (i32, i32, i32) {
    %c0_i32 = arith.constant 0 : i32
    %c0_i32_0 = arith.constant 0 : i32
    %c0_i32_1 = arith.constant 0 : i32
    return %arg0, %c0_i32, %c0_i32_0 : i32, i32, i32
  }
}

</mosaic_0001>

<bundles_post_ra>
// kernel: up_forward.5
= control target key start
LH: loop header
LB: loop body
LE: loop exit
PB: predicated region body
PF: predicated region fallthrough
CT: control target
= control target key end

     0   :  { %s300_s12 = smov 0   ;;  %s323_s0 = inlined_call_operand.vmem [shape: f32[2,8,256], index: 0, kind: input, shape index: {}, may-alias: {0,3}]   ;;  %s324_s1 = inlined_call_operand.vmem [shape: f32[8,1], index: 1, kind: input, shape index: {}]   ;;  %s325_s2 = inlined_call_operand.vmem [shape: f32[8,1], index: 2, kind: input, shape index: {}]   ;;  %s326_s3 = inlined_call_operand.vmem [shape: f32[2,8,256], index: 3, kind: output, shape index: {}, may-alias: {0,3}]  }
   0x1 LB: > { %s248_s13 = sadd.s32 4294967295, %s277_s12   ;;  %p252_p0 = scmp.ge.s32.totalorder %s277_s12, 1  ;;  %s277_s12 = sphi %s300_s12, %s13_s12  }
   0x2   : > { %p137_p1 = scmp.lt.s32.totalorder %s277_s12, 3 }
   0x4   : > { %p138_p2 = pnand %p252_p0, %p137_p1 }
   0x5   : > { %v173_v0 = vld [vmem:[%s324_s1] sm:$0xff] (!%p138_p2)  ;;  %v279_v1 = vmov (!%p138_p2), 0   ;;  %p161_p3 = scmp.lt.s32.totalorder (!%p138_p2), %s248_s13, 1 }
   0x6   : > { %141 = sbr.rel (%p138_p2) target bundleno = 144 (0x90), region = 32  ;;  %270 = vset.pattern.permute.xlu0 (!%p138_p2), %v279_v1  ;;  %v181_v2 = vld [vmem:[%s325_s2] sm:$0xff] (!%p138_p2) }
   0x7   : > { %176 = vperm.xlu0 (!%p138_p2), %270, %v173_v0  }
   0xb   : > { %184 = vperm.xlu0 (!%p138_p2), %270, %v181_v2  }
   0xd   : > { %s328_s13 = smov (!%p161_p3, %s248_s13), 1 }
   0xe   : > { %s259_s18 = sshll.u32 %s328_s13, 4 }
   0xf   : > { %s165_s21 = scalar_lea.vmem %s323_s0, %s259_s18  ;;  %s170_s24 = scalar_lea.vmem %s326_s3, %s259_s18 }
  0x10   : > { %v171_v4 = vld [vmem:[%s165_s21] sm:$0xff]  ;;  %v172_v5 = vld [vmem:[%s165_s21 + $0x8] sm:$0xff] }
  0x86   : > { %v177_v3 = vpop.permute.xlu0 %176 }
  0x87   : > { %v179_v6 = vmul.f32 %v177_v3, %v171_v4  ;;  %v180_v7 = vmul.f32 %v177_v3, %v172_v5 }
  0x8a   : > { %v185_v8 = vpop.permute.xlu0 %184 }
  0x8b   : > { %v187_v9 = vadd.f32 %v185_v8, %v179_v6  ;;  %v188_v10 = vadd.f32 %v185_v8, %v180_v7 }
  0x8d   : > { %v189_v11 = vmax.f32 %v187_v9, 0.0  ;;  %v190_v12 = vmax.f32 %v188_v10, 0.0 }
  0x8f   : > { %191 = vst [vmem:[%s170_s24] sm:$0xff] %v189_v11  ;;  %192 = vst [vmem:[%s170_s24 + $0x8] sm:$0xff] %v190_v12 }
  0x90 PF: > { %s13_s12 = sadd.s32 1, %s277_s12  }
  0x91   : > { %p10_p4 = scmp.ge.s32.totalorder %s13_s12, 4  }
  0x93   :  { %12 = sbr.rel (!%p10_p4) target bundleno = 1 (0x1), region = 62 }

// kernel: up_forward.4
= control target key start
LH: loop header
LB: loop body
LE: loop exit
PB: predicated region body
PF: predicated region fallthrough
CT: control target
= control target key end

     0   :  { %s1396_s24 = smov 0   ;;  %s1587_s0 = inlined_call_operand.vmem [shape: f32[2,16,256], index: 0, kind: input, shape index: {}]   ;;  %s1588_s1 = inlined_call_operand.vmem [shape: f32[16,1], index: 1, kind: input, shape index: {}]   ;;  %s1589_s2 = inlined_call_operand.vmem [shape: f32[16,1], index: 2, kind: input, shape index: {}]   ;;  %s1590_s3 = inlined_call_operand.vmem [shape: f32[3,8,48], index: 3, kind: input, shape index: {}]   ;;  %s1591_s4 = inlined_call_operand.vmem [shape: f32[9,256], index: 4, kind: input, shape index: {}]   ;;  %s1592_s5 = inlined_call_operand.vmem [shape: f32[2,8,256], index: 5, kind: output, shape index: {0}]   ;;  %s1593_s6 = inlined_call_operand.vmem [shape: f32[2,8,1], index: 6, kind: output, shape index: {1}]   ;;  %s1594_s7 = inlined_call_operand.vmem [shape: f32[2,8,1], index: 7, kind: output, shape index: {2}]  }
   0x1 LB: > { %s1147_s25 = sadd.s32 4294967295, %s1343_s24   ;;  %p1151_p0 = scmp.ge.s32.totalorder %s1343_s24, 1  ;;  %s1343_s24 = sphi %s1396_s24, %s18_s24  }
   0x2   : > { %p242_p1 = scmp.lt.s32.totalorder %s1343_s24, 3 }
   0x4   : > { %p243_p2 = pnand %p1151_p0, %p242_p1 }
   0x5   : > { %v320_v0 = vld [vmem:[%s1589_s2] sm:$0xff] (!%p243_p2)  ;;  %v1345_v2 = vmov (!%p243_p2), 0   ;;  %v321_v3 = vld [vmem:[%s1589_s2 + $0x8] sm:$0xff] (!%p243_p2)  ;;  %p282_p3 = scmp.lt.s32.totalorder (!%p243_p2), %s1147_s25, 1  ;;  %s1346_s15 = smov (!%p243_p2), 1   ;;  %v1349_v27 = vmov (!%p243_p2), 0.0   ;;  %v348_v29 = vlaneseq (!%p243_p2) }
   0x6   : > { %246 = sbr.rel (%p243_p2) target bundleno = 791 (0x317), region = 40  ;;  %v304_v1 = vld [vmem:[%s1588_s1] sm:$0xff] (!%p243_p2)  ;;  %1336 = vset.pattern.permute.xlu1 (!%p243_p2), %v1345_v2  ;;  %1335 = vset.pattern.permute.xlu0 (!%p243_p2), %v1345_v2  ;;  %v305_v4 = vld [vmem:[%s1588_s1 + $0x8] sm:$0xff] (!%p243_p2)  ;;  %s1347_s16 = smov (!%p243_p2), 127   ;;  %v1355_v28 = vmov (!%p243_p2), 1.0|1.0  }
   0x7   : > { %324 = vperm.xlu1 (!%p243_p2), %1336, %v320_v0   ;;  %308 = vperm.xlu0 (!%p243_p2), %1335, %v304_v1   ;;  %s1348_s17 = smov (!%p243_p2), 17   ;;  %s1350_s18 = smov (!%p243_p2), 16   ;;  %v358_v30 = vshrl.u32 (!%p243_p2), %v348_v29, 7  ;;  %v1484_v32 = vand.u32 (!%p243_p2), 127, %v348_v29  ;;  %vm542_vm3 = vcmask (!%p243_p2), 392192   ;;  %vm955_vm9 = vcmask (!%p243_p2), 7168  }
   0x8   : > { %610 = vmatprep.mubr.f32.mxu0 (!%p243_p2), %v1349_v27  ;;  %s1351_s19 = smov (!%p243_p2), 15   ;;  %s1352_s20 = smov (!%p243_p2), 113   ;;  %1280 = vmatprep.subr.bf16.mxu1 (!%p243_p2), %v1355_v28  ;;  %v1160_v35 = vld [vmem:[%s1591_s4 + $0x3] ss:$8 sm:$0x3] (!%p243_p2) }
   0x9   : > { %s1353_s21 = smov (!%p243_p2), 112   ;;  %s1354_s22 = smov (!%p243_p2), 111   ;;  %1281 = vmatpush3.bf16.msra.mxu1 (!%p243_p2), %v1355_v28  ;;  %v1486_v33 = vsub.s32 (!%p243_p2), 0, %v358_v30  ;;  %v1488_v34 = vsub.s32 (!%p243_p2), 1, %v358_v30  ;;  %vm464_vm0 = vcmp.lt.s32.totalorder (!%p243_p2), %v1484_v32, 1  ;;  %vm502_vm1 = vcmp.lt.s32.totalorder (!%p243_p2), %v1484_v32, 127 }
   0xa   : > { %1282 = vmatprep.subr.bf16.mxu1 (!%p243_p2), %v1355_v28  ;;  %v1161_v50 = vld [vmem:[%s1591_s4 + $0x5] ss:$8 sm:$0x3] (!%p243_p2)  ;;  %vm350_vm2 = vcmp.lt.s32.totalorder (!%p243_p2), %v1484_v32, 17  ;;  %vm383_vm4 = vcmp.lt.s32.totalorder (!%p243_p2), %v1484_v32, 16  ;;  %vm417_vm5 = vcmp.lt.s32.totalorder (!%p243_p2), %v1484_v32, 15 }
   0xb   : > { %329 = vperm.xlu1 (!%p243_p2), %1336, %v321_v3   ;;  %313 = vperm.xlu0 (!%p243_p2), %1335, %v305_v4   ;;  %v475_v38 = vrot.slane (!%p243_p2), %v1160_v35, %v1486_v33  ;;  %v479_v39 = vrot.slane (!%p243_p2), %v1160_v35, %v1488_v34  ;;  %v513_v55 = vrot.slane (!%p243_p2), %v1161_v50, %v1486_v33  ;;  %v355_v3 = vld [vmem:[%s1591_s4] ss:$8 sm:$0x3] (!%p243_p2)  ;;  %vm699_vm6 = vcmp.lt.s32.totalorder (!%p243_p2), %v1484_v32, 113 }
   0xc   : > { %v517_v56 = vrot.slane (!%p243_p2), %v1161_v50, %v1488_v34  ;;  %vm733_vm7 = vcmp.lt.s32.totalorder (!%p243_p2), %v1484_v32, 112  ;;  %vm767_vm8 = vcmp.lt.s32.totalorder (!%p243_p2), %v1484_v32, 111 }
   0xd   : > { %s1596_s25 = smov (!%p282_p3, %s1147_s25), 1  ;;  %1283 = vmatpush3.bf16.msra.mxu1 %v1355_v28 }
   0xe   : > { %s1172_s11 = sshll.u32 %s1596_s25, 5  ;;  %1284 = vmatprep.subr.bf16.mxu1 %v1355_v28  ;;  %s1173_s26 = sshll.u32 %s1596_s25, 4 }
   0xf   : > { %s286_s14 = scalar_lea.vmem %s1587_s0, %s1172_s11  ;;  %s291_s29 = scalar_lea.vmem %s1592_s5, %s1173_s26 }
  0x10   : > { %v300_v5 = vld [vmem:[%s286_s14] sm:$0xff]  ;;  %v301_v6 = vld [vmem:[%s286_s14 + $0x8] sm:$0xff]  ;;  %v302_v11 = vld [vmem:[%s286_s14 + $0x10] sm:$0xff]  ;;  %s1156_s30 = sshll.u32 %s1596_s25, 3 }
  0x11   : > { %v303_v12 = vld [vmem:[%s286_s14 + $0x18] sm:$0xff]  ;;  %1285 = vmatpush3.bf16.msra.mxu1 %v1355_v28  ;;  %s295_s10 = scalar_lea.vmem %s1593_s6, %s1156_s30  ;;  %s299_s13 = scalar_lea.vmem %s1594_s7, %s1156_s30 }
  0x12   : > { %1286 = vmatprep.subr.bf16.mxu1 %v1355_v28 }
  0x15   : > { %1287 = vmatpush3.bf16.msra.mxu1 %v1355_v28 }
  0x16   : > { %1288 = vmatprep.subr.bf16.mxu1 %v1355_v28 }
  0x19   : > { %1289 = vmatpush3.bf16.msra.mxu1 %v1355_v28 }
  0x1a   : > { %1290 = vmatprep.subr.bf16.mxu1 %v1355_v28 }
  0x1d   : > { %1291 = vmatpush3.bf16.msra.mxu1 %v1355_v28 }
  0x1e   : > { %1292 = vmatprep.subr.bf16.mxu1 %v1355_v28 }
  0x21   : > { %1293 = vmatpush3.bf16.msra.mxu1 %v1355_v28 }
  0x22   : > { %1294 = vmatprep.subr.bf16.mxu1 %v1355_v28 }
  0x25   : > { %1295 = vmatpush3.bf16.msra.mxu1 %v1355_v28 }
  0x26   : > { %1296 = vmatprep.subr.bf16.mxu1 %v1355_v28 }
  0x86   : > { %v325_v7 = vpop.permute.xlu1 %324  ;;  %v309_v8 = vpop.permute.xlu0 %308 }
  0x87   : > { %v316_v9 = vmul.f32 %v309_v8, %v300_v5  ;;  %v317_v10 = vmul.f32 %v309_v8, %v301_v6  ;;  %v360_v8 = vrot.slane %v355_v3, %v1486_v33 }
  0x89   : > { %v332_v13 = vadd.f32 %v325_v7, %v316_v9  ;;  %v333_v15 = vadd.f32 %v325_v7, %v317_v10  ;;  %v364_v9 = vrot.slane %v355_v3, %v1488_v34 }
  0x8a   : > { %v314_v14 = vpop.permute.xlu0 %313  ;;  %v330_v19 = vpop.permute.xlu1 %329 }
  0x8b   : > { %v1422_v16 = vmax.f32 %v332_v13, 0.0  ;;  %v318_v17 = vmul.f32 %v314_v14, %v302_v11  ;;  %v319_v18 = vmul.f32 %v314_v14, %v303_v12  ;;  %v1425_v22 = vmax.f32 %v333_v15, 0.0  ;;  %v1162_v12 = vld [vmem:[%s1590_s3 + $0x8] sm:$0xff] }
  0x8d   : > { %v334_v20 = vadd.f32 %v330_v19, %v318_v17  ;;  %v335_v21 = vadd.f32 %v330_v19, %v319_v18  ;;  %456 = vrot.lane.b32.xlu0 %v1422_v16, %s1346_s15 }
  0x8f   : > { %v1427_v23 = vmax.f32 %v334_v20, 0.0  ;;  %v1429_v24 = vmax.f32 %v335_v21, 0.0  ;;  %v1158_v21 = vld [vmem:[%s1591_s4 + $0x1] ss:$8 sm:$0x3] }
  0x90   : > { %v398_v29 = vrot.slane %v1158_v21, %v1488_v34 }
  0x91   : > { %458 = vrot.lane.b32.xlu1 %v1427_v23, %s1346_s15  ;;  %460 = vrot.lane.b32.xlu0 %v1425_v22, %s1346_s15  ;;  %v1248_v25 = vpack.c.bf16 %v1429_v24, %v1425_v22  ;;  %v1250_v26 = vpack.c.bf16 %v1427_v23, %v1422_v16 }
  0x95   : > { %462 = vrot.lane.b32.xlu1 %v1429_v24, %s1346_s15  ;;  %494 = vrot.lane.b32.xlu0 %v1422_v16, %s1347_s16 }
  0x99   : > { %496 = vrot.lane.b32.xlu1 %v1427_v23, %s1347_s16  ;;  %498 = vrot.lane.b32.xlu0 %v1425_v22, %s1347_s16 }
  0x9d   : > { %500 = vrot.lane.b32.xlu1 %v1429_v24, %s1347_s16  ;;  %340 = vrot.lane.b32.xlu0 %v1422_v16, %s1348_s17 }
  0xa1   : > { %342 = vrot.lane.b32.xlu1 %v1427_v23, %s1348_s17  ;;  %344 = vrot.lane.b32.xlu0 %v1425_v22, %s1348_s17 }
  0xa5   : > { %346 = vrot.lane.b32.xlu1 %v1429_v24, %s1348_s17  ;;  %375 = vrot.lane.b32.xlu0 %v1422_v16, %s1350_s18 }
  0xa9   : > { %377 = vrot.lane.b32.xlu1 %v1427_v23, %s1350_s18  ;;  %379 = vrot.lane.b32.xlu0 %v1425_v22, %s1350_s18 }
  0xad   : > { %381 = vrot.lane.b32.xlu1 %v1429_v24, %s1350_s18  ;;  %409 = vrot.lane.b32.xlu0 %v1422_v16, %s1351_s19 }
  0xb1   : > { %411 = vrot.lane.b32.xlu1 %v1427_v23, %s1351_s19  ;;  %413 = vrot.lane.b32.xlu0 %v1425_v22, %s1351_s19 }
  0xb5   : > { %415 = vrot.lane.b32.xlu1 %v1429_v24, %s1351_s19  ;;  %691 = vrot.lane.b32.xlu0 %v1422_v16, %s1352_s20 }
  0xb9   : > { %693 = vrot.lane.b32.xlu1 %v1427_v23, %s1352_s20  ;;  %695 = vrot.lane.b32.xlu0 %v1425_v22, %s1352_s20 }
  0xbd   : > { %697 = vrot.lane.b32.xlu1 %v1429_v24, %s1352_s20  ;;  %725 = vrot.lane.b32.xlu0 %v1422_v16, %s1353_s21 }
  0xc1   : > { %727 = vrot.lane.b32.xlu1 %v1427_v23, %s1353_s21  ;;  %729 = vrot.lane.b32.xlu0 %v1425_v22, %s1353_s21 }
  0xc5   : > { %731 = vrot.lane.b32.xlu1 %v1429_v24, %s1353_s21  ;;  %759 = vrot.lane.b32.xlu0 %v1422_v16, %s1354_s22 }
  0xc9   : > { %761 = vrot.lane.b32.xlu1 %v1427_v23, %s1354_s22  ;;  %763 = vrot.lane.b32.xlu0 %v1425_v22, %s1354_s22 }
  0xcd   : > { %765 = vrot.lane.b32.xlu1 %v1429_v24, %s1354_s22 }
  0xff   : > { %v457_v31 = vpop.permute.xlu0 %456 }
 0x103   : > { %v459_v36 = vpop.permute.xlu1 %458  ;;  %v461_v37 = vpop.permute.xlu0 %460 }
 0x104   : > { %v465_v40 = vsel %vm464_vm0, %v457_v31, %v461_v37  ;;  %v467_v41 = vsel %vm464_vm0, %v461_v37, %v457_v31 }
 0x105   : > { %v482_v46 = vmul.f32 %v475_v38, %v467_v41  ;;  %v483_v48 = vmul.f32 %v479_v39, %v465_v40 }
 0x107   : > { %v463_v42 = vpop.permute.xlu1 %462  ;;  %v495_v43 = vpop.permute.xlu0 %494 }
 0x108   : > { %v466_v44 = vsel %vm464_vm0, %v459_v36, %v463_v42  ;;  %v468_v45 = vsel %vm464_vm0, %v463_v42, %v459_v36 }
 0x109   : > { %v484_v47 = vmul.f32 %v475_v38, %v468_v45  ;;  %v485_v49 = vmul.f32 %v479_v39, %v466_v44 }
 0x10b   : > { %v497_v51 = vpop.permute.xlu1 %496  ;;  %v499_v52 = vpop.permute.xlu0 %498  ;;  %v1244_v53 = vpack.c.bf16 %v485_v49, %v483_v48  ;;  %v1246_v54 = vpack.c.bf16 %v484_v47, %v482_v46 }
 0x10c   : > { %v503_v57 = vsel %vm502_vm1, %v495_v43, %v499_v52  ;;  %v505_v58 = vsel %vm502_vm1, %v499_v52, %v495_v43  ;;  %v1159_v43 = vld [vmem:[%s1591_s4 + $0x2] ss:$8 sm:$0x3] }
 0x10d   : > { %1245 = vmatprep.subr.bf16.mxu0 %v1244_v53  ;;  %v520_v63 = vmul.f32 %v513_v55, %v503_v57  ;;  %v521_v0 = vmul.f32 %v517_v56, %v505_v58  ;;  %v428_v48 = vrot.slane %v1159_v43, %v1486_v33  ;;  %v432_v49 = vrot.slane %v1159_v43, %v1488_v34 }
 0x10e   : > { %1247 = vmatpush1.bf16.msra.mxu0 %v1246_v54 }
 0x10f   : > { %v501_v59 = vpop.permute.xlu1 %500  ;;  %1249 = vmatprep.subr.bf16.mxu0 %v1248_v25  ;;  %v341_v60 = vpop.permute.xlu0 %340 }
 0x110   : > { %v504_v61 = vsel %vm502_vm1, %v497_v51, %v501_v59  ;;  %v506_v62 = vsel %vm502_vm1, %v501_v59, %v497_v51 }
 0x111   : > { %v522_v1 = vmul.f32 %v513_v55, %v504_v61  ;;  %v523_v2 = vmul.f32 %v517_v56, %v506_v62 }
 0x112   : > { %1251 = vmatpush1.bf16.msra.mxu0 %v1250_v26  ;;  %v394_v26 = vrot.slane %v1158_v21, %v1486_v33 }
 0x113   : > { %v343_v4 = vpop.permute.xlu1 %342  ;;  %v345_v5 = vpop.permute.xlu0 %344  ;;  %v1252_v6 = vpack.c.bf16 %v523_v2, %v521_v0  ;;  %v1254_v7 = vpack.c.bf16 %v522_v1, %v520_v63 }
 0x114   : > { %v351_v10 = vsel %vm350_vm2, %v341_v60, %v345_v5  ;;  %v353_v11 = vsel %vm350_vm2, %v345_v5, %v341_v60  ;;  %v1165_v60 = vld [vmem:[%s1591_s4 + $0x6] ss:$8 sm:$0x3] }
 0x115   : > { %1253 = vmatprep.subr.bf16.mxu0 %v1252_v6  ;;  %v367_v17 = vmul.f32 %v360_v8, %v353_v11  ;;  %v368_v18 = vmul.f32 %v364_v9, %v351_v10  ;;  %v710_v1 = vrot.slane %v1165_v60, %v1486_v33  ;;  %v714_v2 = vrot.slane %v1165_v60, %v1488_v34  ;;  %v443_v5 = vld [vmem:[%s1590_s3] sm:$0xff] }
 0x116   : > { %1255 = vmatpush1.bf16.msra.mxu0 %v1254_v7 }
 0x117   : > { %v347_v13 = vpop.permute.xlu1 %346  ;;  %v376_v14 = vpop.permute.xlu0 %375 }
 0x118   : > { %v352_v15 = vsel %vm350_vm2, %v343_v4, %v347_v13  ;;  %v354_v16 = vsel %vm350_vm2, %v347_v13, %v343_v4 }
 0x119   : > { %v369_v19 = vmul.f32 %v360_v8, %v354_v16  ;;  %v370_v20 = vmul.f32 %v364_v9, %v352_v15  ;;  %1163 = vmatmul.mubr.msk.f32.vlgmr.msra.gmra.mrb[0].mxu0 %vm542_vm3, %v1162_v12 }
 0x11a   : > { %684 = vmatprep.mubr.f32.mxu0 %v1349_v27 }
 0x11b   : > { %v1258_v22 = vpack.c.bf16 %v369_v19, %v367_v17  ;;  %v378_v23 = vpop.permute.xlu1 %377  ;;  %v380_v24 = vpop.permute.xlu0 %379  ;;  %v1256_v25 = vpack.c.bf16 %v370_v20, %v368_v18 }
 0x11c   : > { %v384_v30 = vsel %vm383_vm4, %v376_v14, %v380_v24  ;;  %v386_v31 = vsel %vm383_vm4, %v380_v24, %v376_v14  ;;  %v1166_v14 = vld [vmem:[%s1591_s4 + $0x7] ss:$8 sm:$0x3] }
 0x11d   : > { %1257 = vmatprep.subr.bf16.mxu0 %v1256_v25  ;;  %v401_v39 = vmul.f32 %v394_v26, %v386_v31  ;;  %v402_v40 = vmul.f32 %v398_v29, %v384_v30  ;;  %v744_v19 = vrot.slane %v1166_v14, %v1486_v33  ;;  %v748_v20 = vrot.slane %v1166_v14, %v1488_v34 }
 0x11e   : > { %1259 = vmatpush1.bf16.msra.mxu0 %v1258_v22 }
 0x11f   : > { %v382_v35 = vpop.permute.xlu1 %381  ;;  %v410_v36 = vpop.permute.xlu0 %409 }
 0x120   : > { %v385_v37 = vsel %vm383_vm4, %v378_v23, %v382_v35  ;;  %v387_v38 = vsel %vm383_vm4, %v382_v35, %v378_v23  ;;  %v1167_v35 = vld [vmem:[%s1591_s4 + $0x10] ss:$8 sm:$0x3] }
 0x121   : > { %v403_v41 = vmul.f32 %v394_v26, %v387_v38  ;;  %v404_v42 = vmul.f32 %v398_v29, %v385_v37 }
 0x123   : > { %v1262_v44 = vpack.c.bf16 %v403_v41, %v401_v39  ;;  %v412_v45 = vpop.permute.xlu1 %411  ;;  %v414_v46 = vpop.permute.xlu0 %413  ;;  %v1260_v47 = vpack.c.bf16 %v404_v42, %v402_v40  ;;  %v778_v40 = vrot.slane %v1167_v35, %v1486_v33  ;;  %v782_v41 = vrot.slane %v1167_v35, %v1488_v34  ;;  %v1168_v33 = vld [vmem:[%s1590_s3 + $0x10] sm:$0xff] }
 0x124   : > { %v418_v50 = vsel %vm417_vm5, %v410_v36, %v414_v46  ;;  %v420_v51 = vsel %vm417_vm5, %v414_v46, %v410_v36 }
 0x125   : > { %1261 = vmatprep.subr.bf16.mxu0 %v1260_v47  ;;  %v435_v56 = vmul.f32 %v428_v48, %v420_v51  ;;  %v436_v57 = vmul.f32 %v432_v49, %v418_v50 }
 0x126   : > { %1263 = vmatpush1.bf16.msra.mxu0 %v1262_v44 }
 0x127   : > { %v416_v52 = vpop.permute.xlu1 %415  ;;  %v692_v53 = vpop.permute.xlu0 %691 }
 0x128   : > { %v419_v54 = vsel %vm417_vm5, %v412_v45, %v416_v52  ;;  %v421_v55 = vsel %vm417_vm5, %v416_v52, %v412_v45 }
 0x129   : > { %v437_v58 = vmul.f32 %v428_v48, %v421_v55  ;;  %v438_v59 = vmul.f32 %v432_v49, %v419_v54 }
 0x12b   : > { %v1266_v61 = vpack.c.bf16 %v437_v58, %v435_v56  ;;  %v694_v62 = vpop.permute.xlu1 %693  ;;  %v696_v63 = vpop.permute.xlu0 %695  ;;  %v1264_v0 = vpack.c.bf16 %v438_v59, %v436_v57 }
 0x12c   : > { %v700_v3 = vsel %vm699_vm6, %v692_v53, %v696_v63  ;;  %v702_v4 = vsel %vm699_vm6, %v696_v63, %v692_v53 }
 0x12d   : > { %1265 = vmatprep.subr.bf16.mxu0 %v1264_v0  ;;  %v717_v10 = vmul.f32 %v710_v1, %v700_v3  ;;  %v718_v11 = vmul.f32 %v714_v2, %v702_v4 }
 0x12e   : > { %1267 = vmatpush1.bf16.msra.mxu0 %v1266_v61 }
 0x12f   : > { %v698_v6 = vpop.permute.xlu1 %697  ;;  %v726_v7 = vpop.permute.xlu0 %725 }
 0x130   : > { %v701_v8 = vsel %vm699_vm6, %v694_v62, %v698_v6  ;;  %v703_v9 = vsel %vm699_vm6, %v698_v6, %v694_v62 }
 0x131   : > { %v719_v12 = vmul.f32 %v710_v1, %v701_v8  ;;  %v720_v13 = vmul.f32 %v714_v2, %v703_v9  ;;  %1164 = vmatmul.mubr.msk.f32.vlgmr.msra.gmra.mrb[0].mxu0 %vm542_vm3, %v443_v5 }
 0x132   : > { %874 = vmatprep.mubr.f32.mxu0 %v1349_v27 }
 0x133   : > { %v1270_v15 = vpack.c.bf16 %v719_v12, %v717_v10  ;;  %v728_v16 = vpop.permute.xlu1 %727  ;;  %v730_v17 = vpop.permute.xlu0 %729  ;;  %v1268_v18 = vpack.c.bf16 %v720_v13, %v718_v11 }
 0x134   : > { %v734_v21 = vsel %vm733_vm7, %v726_v7, %v730_v17  ;;  %v736_v22 = vsel %vm733_vm7, %v730_v17, %v726_v7 }
 0x135   : > { %1269 = vmatprep.subr.bf16.mxu0 %v1268_v18  ;;  %v751_v29 = vmul.f32 %v744_v19, %v734_v21  ;;  %v752_v27 = vmul.f32 %v748_v20, %v736_v22 }
 0x136   : > { %1271 = vmatpush1.bf16.msra.mxu0 %v1270_v15 }
 0x137   : > { %v732_v23 = vpop.permute.xlu1 %731  ;;  %v760_v24 = vpop.permute.xlu0 %759 }
 0x138   : > { %v735_v25 = vsel %vm733_vm7, %v728_v16, %v732_v23  ;;  %v737_v26 = vsel %vm733_vm7, %v732_v23, %v728_v16 }
 0x139   : > { %v753_v30 = vmul.f32 %v744_v19, %v735_v25  ;;  %v754_v31 = vmul.f32 %v748_v20, %v737_v26 }
 0x13b   : > { %v1274_v36 = vpack.c.bf16 %v753_v30, %v751_v29  ;;  %v762_v37 = vpop.permute.xlu1 %761  ;;  %v764_v38 = vpop.permute.xlu0 %763  ;;  %v1272_v39 = vpack.c.bf16 %v754_v31, %v752_v27 }
 0x13c   : > { %v768_v42 = vsel %vm767_vm8, %v760_v24, %v764_v38  ;;  %v770_v43 = vsel %vm767_vm8, %v764_v38, %v760_v24 }
 0x13d   : > { %1273 = vmatprep.subr.bf16.mxu0 %v1272_v39  ;;  %v785_v47 = vmul.f32 %v778_v40, %v768_v42  ;;  %v786_v48 = vmul.f32 %v782_v41, %v770_v43 }
 0x13e   : > { %1275 = vmatpush1.bf16.msra.mxu0 %v1274_v36 }
 0x13f   : > { %v766_v44 = vpop.permute.xlu1 %765 }
 0x140   : > { %v769_v45 = vsel %vm767_vm8, %v762_v37, %v766_v44  ;;  %v771_v46 = vsel %vm767_vm8, %v766_v44, %v762_v37 }
 0x141   : > { %v787_v49 = vmul.f32 %v778_v40, %v769_v45  ;;  %v788_v50 = vmul.f32 %v782_v41, %v771_v46 }
 0x143   : > { %v1278_v51 = vpack.c.bf16 %v787_v49, %v785_v47  ;;  %v1276_v32 = vpack.c.bf16 %v788_v50, %v786_v48 }
 0x145   : > { %1277 = vmatprep.subr.bf16.mxu0 %v1276_v32 }
 0x146   : > { %1279 = vmatpush1.bf16.msra.mxu0 %v1278_v51 }
 0x149   : > { %1169 = vmatmul.mubr.msk.f32.vlgmr.msra.gmra.mrb[0].mxu0 %vm542_vm3, %v1168_v33 }
 0x21c   : > { %v876_v34 = vpop.f32.mrb[0].mxu0 }
 0x21d   : > { %v878_v52 = vpop.f32.mrb[1].mxu0  ;;  %883 = vst [vmem:[%s291_s29] sm:$0xff] %v876_v34  ;;  %v957_v54 = vmul.f32 %v876_v34, %v876_v34 }
 0x21e   : > { %884 = vst [vmem:[%s291_s29 + $0x8] sm:$0xff] %v878_v52  ;;  %v958_v53 = vmul.f32 %v878_v52, %v878_v52  ;;  %949 = vmatprep.mubr.f32.mxu1 %v878_v52 }
 0x21f   : > { %950 = vmatmul.mubr.f32.vlgmr.msra.gmra.mrb[0].mxu1 %v876_v34 }
 0x220   : > { %1297 = vmatpush3.bf16.msra.mxu1 %v1355_v28  ;;  %1023 = vmatprep.mubr.f32.mxu1 %v958_v53 }
 0x221   : > { %1298 = vmatprep.subr.bf16.mxu1 %v1355_v28 }
 0x224   : > { %1299 = vmatpush3.bf16.msra.mxu1 %v1355_v28 }
 0x225   : > { %1300 = vmatprep.subr.bf16.mxu1 %v1355_v28 }
 0x228   : > { %1301 = vmatpush3.bf16.msra.mxu1 %v1355_v28 }
 0x229   : > { %1302 = vmatprep.subr.bf16.mxu1 %v1355_v28 }
 0x22c   : > { %1303 = vmatpush3.bf16.msra.mxu1 %v1355_v28 }
 0x22d   : > { %1304 = vmatprep.subr.bf16.mxu1 %v1355_v28 }
 0x230   : > { %1305 = vmatpush3.bf16.msra.mxu1 %v1355_v28 }
 0x231   : > { %1306 = vmatprep.subr.bf16.mxu1 %v1355_v28 }
 0x234   : > { %1307 = vmatpush3.bf16.msra.mxu1 %v1355_v28 }
 0x235   : > { %1308 = vmatprep.subr.bf16.mxu1 %v1355_v28 }
 0x238   : > { %1309 = vmatpush3.bf16.msra.mxu1 %v1355_v28 }
 0x239   : > { %1310 = vmatprep.subr.bf16.mxu1 %v1355_v28 }
 0x23c   : > { %1311 = vmatpush3.bf16.msra.mxu1 %v1355_v28 }
 0x23f   : > { %1024 = vmatmul.mubr.f32.vlgmr.msra.gmra.mrb[2].mxu1 %v957_v54 }
 0x2f2   : > { %v1206_v55 = vpop.f32.mrb[0].mxu1 }
 0x2f3   : > { %v1207_v56 = vpop.f32.mrb[1].mxu1 }
 0x2f4   : > { %v1208_v57 = vadd.f32 %v1207_v56, %v1206_v55 }
 0x2f6   : > { %956 = vst.msk [vmem:[%s295_s10] sm:$0xff] %vm955_vm9, %v1208_v57 }
 0x312   : > { %v1241_v58 = vpop.f32.mrb[2].mxu1 }
 0x313   : > { %v1242_v59 = vpop.f32.mrb[3].mxu1 }
 0x314   : > { %v1243_v60 = vadd.f32 %v1242_v59, %v1241_v58 }
 0x316   : > { %1029 = vst.msk [vmem:[%s299_s13] sm:$0xff] %vm955_vm9, %v1243_v60 }
 0x317 PF: > { %s18_s24 = sadd.s32 1, %s1343_s24  }
 0x318   : > { %p15_p4 = scmp.ge.s32.totalorder %s18_s24, 4  }
 0x31a   :  { %17 = sbr.rel (!%p15_p4) target bundleno = 1 (0x1), region = 103 }

// kernel: up_forward.3
= control target key start
LH: loop header
LB: loop body
LE: loop exit
PB: predicated region body
PF: predicated region fallthrough
CT: control target
= control target key end

     0   :  { %s1434_s21 = smov 0   ;;  %s1636_s0 = inlined_call_operand.vmem [shape: f32[2,8,256], index: 0, kind: input, shape index: {}]   ;;  %s1637_s1 = inlined_call_operand.vmem [shape: f32[2,8,256], index: 1, kind: input, shape index: {}]   ;;  %s1638_s2 = inlined_call_operand.vmem [shape: f32[3,16,48], index: 2, kind: input, shape index: {}]   ;;  %s1639_s3 = inlined_call_operand.vmem [shape: f32[9,256], index: 3, kind: input, shape index: {}]   ;;  %s1640_s4 = inlined_call_operand.vmem [shape: f32[2,16,256], index: 4, kind: output, shape index: {0}]   ;;  %s1641_s5 = inlined_call_operand.vmem [shape: f32[2,16,1], index: 5, kind: output, shape index: {1}]   ;;  %s1642_s6 = inlined_call_operand.vmem [shape: f32[2,16,1], index: 6, kind: output, shape index: {2}]  }
   0x1 LB: > { %s1172_s22 = sadd.s32 4294967295, %s1387_s21   ;;  %p1176_p0 = scmp.ge.s32.totalorder %s1387_s21, 1  ;;  %s1387_s21 = sphi %s1434_s21, %s17_s21  }
   0x2   : > { %p227_p1 = scmp.lt.s32.totalorder %s1387_s21, 3 }
   0x4   : > { %p228_p2 = pnand %p1176_p0, %p227_p1 }
   0x5   : > { %p272_p3 = scmp.lt.s32.totalorder (!%p228_p2), %s1172_s22, 1  ;;  %s1389_s30 = smov (!%p228_p2), 1   ;;  %v1391_v6 = vmov (!%p228_p2), 0.0   ;;  %v1398_v7 = vmov (!%p228_p2), 1.0|1.0   ;;  %v309_v8 = vlaneseq (!%p228_p2)  ;;  %v1191_v52 = vld [vmem:[%s1638_s2 + $0x10] sm:$0xff] (!%p228_p2) }
   0x6   : > { %231 = sbr.rel (%p228_p2) target bundleno = 667 (0x29b), region = 36  ;;  %s1390_s7 = smov (!%p228_p2), 127   ;;  %576 = vmatprep.mubr.f32.mxu0 (!%p228_p2), %v1391_v6  ;;  %1323 = vmatprep.subr.bf16.mxu1 (!%p228_p2), %v1398_v7  ;;  %v1189_v13 = vld [vmem:[%s1639_s3 + $0x3] ss:$8 sm:$0x3] (!%p228_p2)  ;;  %vm505_vm3 = vcmask (!%p228_p2), 392192  }
   0x7   : > { %s1392_s8 = smov (!%p228_p2), 17   ;;  %s1393_s9 = smov (!%p228_p2), 16   ;;  %1324 = vmatpush3.bf16.msra.mxu1 (!%p228_p2), %v1398_v7  ;;  %v319_v9 = vshrl.u32 (!%p228_p2), %v309_v8, 7  ;;  %v1517_v10 = vand.u32 (!%p228_p2), 127, %v309_v8  ;;  %vm955_vm9 = vcmask (!%p228_p2), 7168  }
   0x8   : > { %s1394_s10 = smov (!%p228_p2), 15   ;;  %s1395_s11 = smov (!%p228_p2), 113   ;;  %1325 = vmatprep.subr.bf16.mxu1 (!%p228_p2), %v1398_v7  ;;  %v1190_v28 = vld [vmem:[%s1639_s3 + $0x5] ss:$8 sm:$0x3] (!%p228_p2) }
   0x9   : > { %s1396_s12 = smov (!%p228_p2), 112   ;;  %s1397_s13 = smov (!%p228_p2), 111   ;;  %v1519_v11 = vsub.s32 (!%p228_p2), 0, %v319_v9  ;;  %v1521_v12 = vsub.s32 (!%p228_p2), 1, %v319_v9  ;;  %vm426_vm0 = vcmp.lt.s32.totalorder (!%p228_p2), %v1517_v10, 1  ;;  %vm464_vm1 = vcmp.lt.s32.totalorder (!%p228_p2), %v1517_v10, 127 }
   0xa   : > { %v316_v45 = vld [vmem:[%s1639_s3] ss:$8 sm:$0x3] (!%p228_p2)  ;;  %vm311_vm2 = vcmp.lt.s32.totalorder (!%p228_p2), %v1517_v10, 17  ;;  %vm344_vm4 = vcmp.lt.s32.totalorder (!%p228_p2), %v1517_v10, 16  ;;  %vm378_vm5 = vcmp.lt.s32.totalorder (!%p228_p2), %v1517_v10, 15 }
   0xb   : > { %1326 = vmatpush3.bf16.msra.mxu1 (!%p228_p2), %v1398_v7  ;;  %v437_v16 = vrot.slane (!%p228_p2), %v1189_v13, %v1519_v11  ;;  %v441_v17 = vrot.slane (!%p228_p2), %v1189_v13, %v1521_v12  ;;  %v475_v33 = vrot.slane (!%p228_p2), %v1190_v28, %v1519_v11  ;;  %v479_v34 = vrot.slane (!%p228_p2), %v1190_v28, %v1521_v12  ;;  %v1187_v63 = vld [vmem:[%s1639_s3 + $0x1] ss:$8 sm:$0x3] (!%p228_p2) }
   0xc   : > { %1327 = vmatprep.subr.bf16.mxu1 (!%p228_p2), %v1398_v7  ;;  %v321_v50 = vrot.slane (!%p228_p2), %v316_v45, %v1519_v11  ;;  %v325_v51 = vrot.slane (!%p228_p2), %v316_v45, %v1521_v12  ;;  %v359_v8 = vrot.slane (!%p228_p2), %v1187_v63, %v1521_v12  ;;  %vm680_vm6 = vcmp.lt.s32.totalorder (!%p228_p2), %v1517_v10, 113 }
   0xd   : > { %s1644_s22 = smov (!%p272_p3, %s1172_s22), 1  ;;  %vm714_vm7 = vcmp.lt.s32.totalorder %v1517_v10, 112  ;;  %vm748_vm8 = vcmp.lt.s32.totalorder %v1517_v10, 111  ;;  %v1200_v10 = vld [vmem:[%s1638_s2 + $0x20] sm:$0xff] }
   0xe   : > { %s1445_s23 = sshll.u32 %s1644_s22, 4  ;;  %s1208_s24 = sshll.u32 %s1644_s22, 5 }
   0xf   : > { %s276_s26 = scalar_lea.vmem %s1636_s0, %s1445_s23  ;;  %s281_s29 = scalar_lea.vmem %s1637_s1, %s1445_s23  ;;  %1328 = vmatpush3.bf16.msra.mxu1 %v1398_v7 }
  0x10   : > { %v1455_v0 = vld [vmem:[%s276_s26 + $0x8] sm:$0xff]  ;;  %v1457_v1 = vld [vmem:[%s276_s26] sm:$0xff]  ;;  %1329 = vmatprep.subr.bf16.mxu1 %v1398_v7  ;;  %s286_s27 = scalar_lea.vmem %s1640_s4, %s1208_s24 }
  0x11   : > { %v1459_v2 = vld [vmem:[%s281_s29 + $0x8] sm:$0xff]  ;;  %422 = vrot.lane.b32.xlu1 %v1455_v0, %s1389_s30  ;;  %418 = vrot.lane.b32.xlu0 %v1457_v1, %s1389_s30  ;;  %v1463_v3 = vld [vmem:[%s281_s29] sm:$0xff]  ;;  %s291_s29 = scalar_lea.vmem %s1641_s5, %s1445_s23 }
  0x12   : > { %v1291_v4 = vpack.c.bf16 %v1459_v2, %v1455_v0  ;;  %v1293_v5 = vpack.c.bf16 %v1463_v3, %v1457_v1 }
  0x13   : > { %1330 = vmatpush3.bf16.msra.mxu1 %v1398_v7 }
  0x14   : > { %1331 = vmatprep.subr.bf16.mxu1 %v1398_v7 }
  0x15   : > { %424 = vrot.lane.b32.xlu1 %v1459_v2, %s1389_s30  ;;  %420 = vrot.lane.b32.xlu0 %v1463_v3, %s1389_s30 }
  0x17   : > { %1332 = vmatpush3.bf16.msra.mxu1 %v1398_v7 }
  0x18   : > { %1333 = vmatprep.subr.bf16.mxu1 %v1398_v7 }
  0x19   : > { %458 = vrot.lane.b32.xlu1 %v1463_v3, %s1390_s7  ;;  %456 = vrot.lane.b32.xlu0 %v1457_v1, %s1390_s7 }
  0x1b   : > { %1334 = vmatpush3.bf16.msra.mxu1 %v1398_v7 }
  0x1c   : > { %1335 = vmatprep.subr.bf16.mxu1 %v1398_v7 }
  0x1d   : > { %462 = vrot.lane.b32.xlu1 %v1459_v2, %s1390_s7  ;;  %460 = vrot.lane.b32.xlu0 %v1455_v0, %s1390_s7 }
  0x1f   : > { %1336 = vmatpush3.bf16.msra.mxu1 %v1398_v7 }
  0x20   : > { %1337 = vmatprep.subr.bf16.mxu1 %v1398_v7 }
  0x21   : > { %303 = vrot.lane.b32.xlu1 %v1463_v3, %s1392_s8  ;;  %301 = vrot.lane.b32.xlu0 %v1457_v1, %s1392_s8 }
  0x23   : > { %1338 = vmatpush3.bf16.msra.mxu1 %v1398_v7 }
  0x24   : > { %1339 = vmatprep.subr.bf16.mxu1 %v1398_v7 }
  0x25   : > { %307 = vrot.lane.b32.xlu1 %v1459_v2, %s1392_s8  ;;  %305 = vrot.lane.b32.xlu0 %v1455_v0, %s1392_s8  ;;  %s296_s8 = scalar_lea.vmem %s1642_s6, %s1445_s23 }
  0x29   : > { %338 = vrot.lane.b32.xlu1 %v1463_v3, %s1393_s9  ;;  %336 = vrot.lane.b32.xlu0 %v1457_v1, %s1393_s9 }
  0x2d   : > { %342 = vrot.lane.b32.xlu1 %v1459_v2, %s1393_s9  ;;  %340 = vrot.lane.b32.xlu0 %v1455_v0, %s1393_s9 }
  0x31   : > { %372 = vrot.lane.b32.xlu1 %v1463_v3, %s1394_s10  ;;  %370 = vrot.lane.b32.xlu0 %v1457_v1, %s1394_s10 }
  0x35   : > { %376 = vrot.lane.b32.xlu1 %v1459_v2, %s1394_s10  ;;  %374 = vrot.lane.b32.xlu0 %v1455_v0, %s1394_s10 }
  0x39   : > { %674 = vrot.lane.b32.xlu1 %v1463_v3, %s1395_s11  ;;  %672 = vrot.lane.b32.xlu0 %v1457_v1, %s1395_s11 }
  0x3d   : > { %678 = vrot.lane.b32.xlu1 %v1459_v2, %s1395_s11  ;;  %676 = vrot.lane.b32.xlu0 %v1455_v0, %s1395_s11 }
  0x41   : > { %708 = vrot.lane.b32.xlu1 %v1463_v3, %s1396_s12  ;;  %706 = vrot.lane.b32.xlu0 %v1457_v1, %s1396_s12 }
  0x45   : > { %712 = vrot.lane.b32.xlu1 %v1459_v2, %s1396_s12  ;;  %710 = vrot.lane.b32.xlu0 %v1455_v0, %s1396_s12 }
  0x49   : > { %742 = vrot.lane.b32.xlu1 %v1463_v3, %s1397_s13  ;;  %740 = vrot.lane.b32.xlu0 %v1457_v1, %s1397_s13 }
  0x4d   : > { %746 = vrot.lane.b32.xlu1 %v1459_v2, %s1397_s13  ;;  %744 = vrot.lane.b32.xlu0 %v1455_v0, %s1397_s13  ;;  %v1192_v0 = vld [vmem:[%s1638_s2 + $0x18] sm:$0xff] }
  0x83   : > { %v423_v14 = vpop.permute.xlu1 %422  ;;  %v419_v15 = vpop.permute.xlu0 %418 }
  0x84   : > { %v427_v18 = vsel %vm426_vm0, %v419_v15, %v423_v14  ;;  %v429_v19 = vsel %vm426_vm0, %v423_v14, %v419_v15 }
  0x85   : > { %v444_v24 = vmul.f32 %v437_v16, %v429_v19  ;;  %v445_v26 = vmul.f32 %v441_v17, %v427_v18 }
  0x87   : > { %v425_v20 = vpop.permute.xlu1 %424  ;;  %v421_v21 = vpop.permute.xlu0 %420 }
  0x88   : > { %v428_v22 = vsel %vm426_vm0, %v421_v21, %v425_v20  ;;  %v430_v23 = vsel %vm426_vm0, %v425_v20, %v421_v21 }
  0x89   : > { %v446_v25 = vmul.f32 %v437_v16, %v430_v23  ;;  %v447_v27 = vmul.f32 %v441_v17, %v428_v22  ;;  %v1188_v22 = vld [vmem:[%s1639_s3 + $0x2] ss:$8 sm:$0x3] }
  0x8a   : > { %v393_v28 = vrot.slane %v1188_v22, %v1521_v12 }
  0x8b   : > { %v459_v29 = vpop.permute.xlu1 %458  ;;  %v457_v30 = vpop.permute.xlu0 %456  ;;  %v1287_v31 = vpack.c.bf16 %v447_v27, %v445_v26  ;;  %v1289_v32 = vpack.c.bf16 %v446_v25, %v444_v24  ;;  %v389_v27 = vrot.slane %v1188_v22, %v1519_v11 }
  0x8d   : > { %1288 = vmatprep.subr.bf16.mxu0 %v1287_v31 }
  0x8e   : > { %1290 = vmatpush1.bf16.msra.mxu0 %v1289_v32 }
  0x8f   : > { %v463_v35 = vpop.permute.xlu1 %462  ;;  %v461_v36 = vpop.permute.xlu0 %460  ;;  %1292 = vmatprep.subr.bf16.mxu0 %v1291_v4 }
  0x90   : > { %v466_v37 = vsel %vm464_vm1, %v459_v29, %v463_v35  ;;  %v468_v38 = vsel %vm464_vm1, %v463_v35, %v459_v29  ;;  %v465_v39 = vsel %vm464_vm1, %v457_v30, %v461_v36  ;;  %v467_v40 = vsel %vm464_vm1, %v461_v36, %v457_v30 }
  0x91   : > { %v484_v41 = vmul.f32 %v475_v33, %v466_v37  ;;  %v485_v42 = vmul.f32 %v479_v34, %v468_v38  ;;  %v482_v43 = vmul.f32 %v475_v33, %v465_v39  ;;  %v483_v44 = vmul.f32 %v479_v34, %v467_v40  ;;  %v1197_v39 = vld [vmem:[%s1639_s3 + $0x6] ss:$8 sm:$0x3] }
  0x92   : > { %1294 = vmatpush1.bf16.msra.mxu0 %v1293_v5  ;;  %v355_v5 = vrot.slane %v1187_v63, %v1519_v11  ;;  %v695_v45 = vrot.slane %v1197_v39, %v1521_v12 }
  0x93   : > { %v304_v46 = vpop.permute.xlu1 %303  ;;  %v302_v47 = vpop.permute.xlu0 %301  ;;  %v1295_v48 = vpack.c.bf16 %v485_v42, %v483_v44  ;;  %v1297_v49 = vpack.c.bf16 %v484_v41, %v482_v43  ;;  %v691_v44 = vrot.slane %v1197_v39, %v1519_v11 }
  0x95   : > { %1296 = vmatprep.subr.bf16.mxu0 %v1295_v48 }
  0x96   : > { %1298 = vmatpush1.bf16.msra.mxu0 %v1297_v49 }
  0x97   : > { %v308_v53 = vpop.permute.xlu1 %307  ;;  %v306_v54 = vpop.permute.xlu0 %305 }
  0x98   : > { %v313_v55 = vsel %vm311_vm2, %v304_v46, %v308_v53  ;;  %v315_v56 = vsel %vm311_vm2, %v308_v53, %v304_v46  ;;  %v312_v57 = vsel %vm311_vm2, %v302_v47, %v306_v54  ;;  %v314_v58 = vsel %vm311_vm2, %v306_v54, %v302_v47  ;;  %v404_v46 = vld [vmem:[%s1638_s2] sm:$0xff] }
  0x99   : > { %v330_v59 = vmul.f32 %v321_v50, %v315_v56  ;;  %v331_v60 = vmul.f32 %v325_v51, %v313_v55  ;;  %v328_v61 = vmul.f32 %v321_v50, %v314_v58  ;;  %v329_v62 = vmul.f32 %v325_v51, %v312_v57  ;;  %1193 = vmatmul.mubr.msk.f32.vlgmr.msra.gmra.mrb[0].mxu0 %vm505_vm3, %v1191_v52  ;;  %v1198_v57 = vld [vmem:[%s1639_s3 + $0x7] ss:$8 sm:$0x3] }
  0x9a   : > { %582 = vmatprep.mubr.f32.mxu0 %v1391_v6  ;;  %v405_v58 = vld [vmem:[%s1638_s2 + $0x8] sm:$0xff]  ;;  %v725_v63 = vrot.slane %v1198_v57, %v1519_v11 }
  0x9b   : > { %v1301_v1 = vpack.c.bf16 %v330_v59, %v328_v61  ;;  %v339_v2 = vpop.permute.xlu1 %338  ;;  %v337_v3 = vpop.permute.xlu0 %336  ;;  %v1299_v4 = vpack.c.bf16 %v331_v60, %v329_v62 }
  0x9d   : > { %1300 = vmatprep.subr.bf16.mxu0 %v1299_v4  ;;  %1194 = vmatmul.mubr.msk.f32.gmra.mrb[2].mxu0 %vm505_vm3, %v1192_v0  ;;  %v729_v0 = vrot.slane %v1198_v57, %v1521_v12 }
  0x9e   : > { %1302 = vmatpush1.bf16.msra.mxu0 %v1301_v1  ;;  %659 = vmatprep.mubr.f32.mxu0 %v1391_v6 }
  0x9f   : > { %v343_v9 = vpop.permute.xlu1 %342  ;;  %v341_v13 = vpop.permute.xlu0 %340 }
  0xa0   : > { %v346_v14 = vsel %vm344_vm4, %v339_v2, %v343_v9  ;;  %v348_v15 = vsel %vm344_vm4, %v343_v9, %v339_v2  ;;  %v345_v16 = vsel %vm344_vm4, %v337_v3, %v341_v13  ;;  %v347_v17 = vsel %vm344_vm4, %v341_v13, %v337_v3 }
  0xa1   : > { %v364_v18 = vmul.f32 %v355_v5, %v348_v15  ;;  %v365_v19 = vmul.f32 %v359_v8, %v346_v14  ;;  %v362_v20 = vmul.f32 %v355_v5, %v347_v17  ;;  %v363_v21 = vmul.f32 %v359_v8, %v345_v16  ;;  %v1199_v16 = vld [vmem:[%s1639_s3 + $0x10] ss:$8 sm:$0x3] }
  0xa2   : > { %v763_v22 = vrot.slane %v1199_v16, %v1521_v12 }
  0xa3   : > { %v1305_v23 = vpack.c.bf16 %v364_v18, %v362_v20  ;;  %v373_v24 = vpop.permute.xlu1 %372  ;;  %v371_v25 = vpop.permute.xlu0 %370  ;;  %v1303_v26 = vpack.c.bf16 %v365_v19, %v363_v21  ;;  %v759_v21 = vrot.slane %v1199_v16, %v1519_v11  ;;  %v1201_v11 = vld [vmem:[%s1638_s2 + $0x28] sm:$0xff] }
  0xa5   : > { %1304 = vmatprep.subr.bf16.mxu0 %v1303_v26 }
  0xa6   : > { %1306 = vmatpush1.bf16.msra.mxu0 %v1305_v23 }
  0xa7   : > { %v377_v29 = vpop.permute.xlu1 %376  ;;  %v375_v30 = vpop.permute.xlu0 %374 }
  0xa8   : > { %v380_v31 = vsel %vm378_vm5, %v373_v24, %v377_v29  ;;  %v382_v32 = vsel %vm378_vm5, %v377_v29, %v373_v24  ;;  %v379_v33 = vsel %vm378_vm5, %v371_v25, %v375_v30  ;;  %v381_v34 = vsel %vm378_vm5, %v375_v30, %v371_v25 }
  0xa9   : > { %v398_v35 = vmul.f32 %v389_v27, %v382_v32  ;;  %v399_v36 = vmul.f32 %v393_v28, %v380_v31  ;;  %v396_v37 = vmul.f32 %v389_v27, %v381_v34  ;;  %v397_v38 = vmul.f32 %v393_v28, %v379_v33 }
  0xab   : > { %v1309_v40 = vpack.c.bf16 %v398_v35, %v396_v37  ;;  %v675_v41 = vpop.permute.xlu1 %674  ;;  %v673_v42 = vpop.permute.xlu0 %672  ;;  %v1307_v43 = vpack.c.bf16 %v399_v36, %v397_v38 }
  0xad   : > { %1308 = vmatprep.subr.bf16.mxu0 %v1307_v43 }
  0xae   : > { %1310 = vmatpush1.bf16.msra.mxu0 %v1309_v40 }
  0xaf   : > { %v679_v47 = vpop.permute.xlu1 %678  ;;  %v677_v48 = vpop.permute.xlu0 %676 }
  0xb0   : > { %v682_v49 = vsel %vm680_vm6, %v675_v41, %v679_v47  ;;  %v684_v50 = vsel %vm680_vm6, %v679_v47, %v675_v41  ;;  %v681_v51 = vsel %vm680_vm6, %v673_v42, %v677_v48  ;;  %v683_v52 = vsel %vm680_vm6, %v677_v48, %v673_v42 }
  0xb1   : > { %v700_v53 = vmul.f32 %v691_v44, %v682_v49  ;;  %v701_v54 = vmul.f32 %v695_v45, %v684_v50  ;;  %v698_v55 = vmul.f32 %v691_v44, %v681_v51  ;;  %v699_v56 = vmul.f32 %v695_v45, %v683_v52  ;;  %1195 = vmatmul.mubr.msk.f32.vlgmr.msra.gmra.mrb[0].mxu0 %vm505_vm3, %v404_v46 }
  0xb2   : > { %665 = vmatprep.mubr.f32.mxu0 %v1391_v6 }
  0xb3   : > { %v1313_v59 = vpack.c.bf16 %v700_v53, %v698_v55  ;;  %v709_v60 = vpop.permute.xlu1 %708  ;;  %v707_v61 = vpop.permute.xlu0 %706  ;;  %v1311_v62 = vpack.c.bf16 %v701_v54, %v699_v56 }
  0xb5   : > { %1312 = vmatprep.subr.bf16.mxu0 %v1311_v62  ;;  %1196 = vmatmul.mubr.msk.f32.gmra.mrb[2].mxu0 %vm505_vm3, %v405_v58 }
  0xb6   : > { %1314 = vmatpush1.bf16.msra.mxu0 %v1313_v59  ;;  %859 = vmatprep.mubr.f32.mxu0 %v1391_v6 }
  0xb7   : > { %v713_v1 = vpop.permute.xlu1 %712  ;;  %v711_v2 = vpop.permute.xlu0 %710 }
  0xb8   : > { %v716_v3 = vsel %vm714_vm7, %v709_v60, %v713_v1  ;;  %v718_v4 = vsel %vm714_vm7, %v713_v1, %v709_v60  ;;  %v715_v5 = vsel %vm714_vm7, %v707_v61, %v711_v2  ;;  %v717_v8 = vsel %vm714_vm7, %v711_v2, %v707_v61 }
  0xb9   : > { %v734_v9 = vmul.f32 %v725_v63, %v716_v3  ;;  %v735_v13 = vmul.f32 %v729_v0, %v718_v4  ;;  %v732_v14 = vmul.f32 %v725_v63, %v715_v5  ;;  %v733_v15 = vmul.f32 %v729_v0, %v717_v8 }
  0xbb   : > { %v1317_v17 = vpack.c.bf16 %v734_v9, %v732_v14  ;;  %v743_v18 = vpop.permute.xlu1 %742  ;;  %v741_v19 = vpop.permute.xlu0 %740  ;;  %v1315_v20 = vpack.c.bf16 %v735_v13, %v733_v15 }
  0xbd   : > { %1316 = vmatprep.subr.bf16.mxu0 %v1315_v20 }
  0xbe   : > { %1318 = vmatpush1.bf16.msra.mxu0 %v1317_v17 }
  0xbf   : > { %v747_v23 = vpop.permute.xlu1 %746  ;;  %v745_v24 = vpop.permute.xlu0 %744 }
  0xc0   : > { %v750_v25 = vsel %vm748_vm8, %v743_v18, %v747_v23  ;;  %v752_v26 = vsel %vm748_vm8, %v747_v23, %v743_v18  ;;  %v749_v27 = vsel %vm748_vm8, %v741_v19, %v745_v24  ;;  %v751_v28 = vsel %vm748_vm8, %v745_v24, %v741_v19 }
  0xc1   : > { %v768_v29 = vmul.f32 %v759_v21, %v750_v25  ;;  %v769_v30 = vmul.f32 %v763_v22, %v752_v26  ;;  %v766_v31 = vmul.f32 %v759_v21, %v749_v27  ;;  %v767_v32 = vmul.f32 %v763_v22, %v751_v28 }
  0xc3   : > { %v1321_v33 = vpack.c.bf16 %v768_v29, %v766_v31  ;;  %v1319_v34 = vpack.c.bf16 %v769_v30, %v767_v32 }
  0xc5   : > { %1320 = vmatprep.subr.bf16.mxu0 %v1319_v34 }
  0xc6   : > { %1322 = vmatpush1.bf16.msra.mxu0 %v1321_v33 }
  0xc9   : > { %1202 = vmatmul.mubr.msk.f32.vlgmr.msra.gmra.mrb[0].mxu0 %vm505_vm3, %v1200_v10 }
  0xca   : > { %865 = vmatprep.mubr.f32.mxu0 %v1391_v6 }
  0xcd   : > { %1203 = vmatmul.mubr.msk.f32.gmra.mrb[2].mxu0 %vm505_vm3, %v1201_v11 }
 0x19c   : > { %v861_v12 = vpop.f32.mrb[0].mxu0 }
 0x19d   : > { %876 = vst [vmem:[%s286_s27] sm:$0xff] %v861_v12  ;;  %v863_v35 = vpop.f32.mrb[1].mxu0  ;;  %v958_v38 = vmul.f32 %v861_v12, %v861_v12 }
 0x19e   : > { %877 = vst [vmem:[%s286_s27 + $0x8] sm:$0xff] %v863_v35  ;;  %944 = vmatprep.mubr.f32.mxu1 %v863_v35  ;;  %v959_v37 = vmul.f32 %v863_v35, %v863_v35 }
 0x19f   : > { %945 = vmatmul.mubr.f32.vlgmr.msra.gmra.mrb[0].mxu1 %v861_v12 }
 0x1a0   : > { %1340 = vmatpush3.bf16.msra.mxu1 %v1398_v7  ;;  %v867_v6 = vpop.f32.mrb[2].mxu0 }
 0x1a1   : > { %878 = vst [vmem:[%s286_s27 + $0x10] sm:$0xff] %v867_v6  ;;  %v869_v36 = vpop.f32.mrb[3].mxu0  ;;  %1341 = vmatprep.subr.bf16.mxu1 %v1398_v7  ;;  %v960_v40 = vmul.f32 %v867_v6, %v867_v6 }
 0x1a2   : > { %879 = vst [vmem:[%s286_s27 + $0x18] sm:$0xff] %v869_v36  ;;  %949 = vmatprep.mubr.f32.mxu1 %v869_v36  ;;  %v961_v39 = vmul.f32 %v869_v36, %v869_v36 }
 0x1a3   : > { %950 = vmatmul.mubr.f32.gmra.mrb[2].mxu1 %v867_v6 }
 0x1a4   : > { %1342 = vmatpush3.bf16.msra.mxu1 %v1398_v7  ;;  %1026 = vmatprep.mubr.f32.mxu1 %v959_v37 }
 0x1a5   : > { %1343 = vmatprep.subr.bf16.mxu1 %v1398_v7 }
 0x1a8   : > { %1344 = vmatpush3.bf16.msra.mxu1 %v1398_v7 }
 0x1a9   : > { %1345 = vmatprep.subr.bf16.mxu1 %v1398_v7 }
 0x1ac   : > { %1346 = vmatpush3.bf16.msra.mxu1 %v1398_v7 }
 0x1ad   : > { %1347 = vmatprep.subr.bf16.mxu1 %v1398_v7 }
 0x1b0   : > { %1348 = vmatpush3.bf16.msra.mxu1 %v1398_v7 }
 0x1b1   : > { %1349 = vmatprep.subr.bf16.mxu1 %v1398_v7 }
 0x1b4   : > { %1350 = vmatpush3.bf16.msra.mxu1 %v1398_v7 }
 0x1b5   : > { %1351 = vmatprep.subr.bf16.mxu1 %v1398_v7 }
 0x1b8   : > { %1352 = vmatpush3.bf16.msra.mxu1 %v1398_v7 }
 0x1b9   : > { %1353 = vmatprep.subr.bf16.mxu1 %v1398_v7 }
 0x1bc   : > { %1354 = vmatpush3.bf16.msra.mxu1 %v1398_v7 }
 0x1bf   : > { %1027 = vmatmul.mubr.f32.vlgmr.msra.gmra.mrb[4].mxu1 %v958_v38 }
 0x1c0   : > { %1031 = vmatprep.mubr.f32.mxu1 %v961_v39 }
 0x1c3   : > { %1032 = vmatmul.mubr.f32.gmra.mrb[6].mxu1 %v960_v40 }
 0x272   : > { %v1243_v41 = vpop.f32.mrb[0].mxu1 }
 0x273   : > { %v1244_v42 = vpop.f32.mrb[1].mxu1 }
 0x274   : > { %v1245_v43 = vadd.f32 %v1244_v42, %v1243_v41 }
 0x276   : > { %956 = vst.msk [vmem:[%s291_s29] sm:$0xff] %vm955_vm9, %v1245_v43  ;;  %v1246_v44 = vpop.f32.mrb[2].mxu1 }
 0x277   : > { %v1247_v45 = vpop.f32.mrb[3].mxu1 }
 0x278   : > { %v1248_v46 = vadd.f32 %v1247_v45, %v1246_v44 }
 0x27a   : > { %957 = vst.msk [vmem:[%s291_s29 + $0x8] sm:$0xff] %vm955_vm9, %v1248_v46 }
 0x292   : > { %v1281_v7 = vpop.f32.mrb[4].mxu1 }
 0x293   : > { %v1282_v47 = vpop.f32.mrb[5].mxu1 }
 0x294   : > { %v1283_v48 = vadd.f32 %v1282_v47, %v1281_v7 }
 0x296   : > { %1037 = vst.msk [vmem:[%s296_s8] sm:$0xff] %vm955_vm9, %v1283_v48  ;;  %v1284_v49 = vpop.f32.mrb[6].mxu1 }
 0x297   : > { %v1285_v50 = vpop.f32.mrb[7].mxu1 }
 0x298   : > { %v1286_v51 = vadd.f32 %v1285_v50, %v1284_v49 }
 0x29a   : > { %1038 = vst.msk [vmem:[%s296_s8 + $0x8] sm:$0xff] %vm955_vm9, %v1286_v51 }
 0x29b PF: > { %s17_s21 = sadd.s32 1, %s1387_s21  }
 0x29c   : > { %p14_p4 = scmp.ge.s32.totalorder %s17_s21, 4  }
 0x29e   :  { %16 = sbr.rel (!%p14_p4) target bundleno = 1 (0x1), region = 102 }

</bundles_post_ra>
